<compile_context>
chip_gen: v6e
topology: v6e:2x2x1
jax: 0.10.0
libtpu: 0.0.40
codegen_flags: <defaults>
</compile_context>

<pallas_src>
import jax
import jax.numpy as jnp
from jax.experimental import pallas as pl
from jax.experimental.pallas import tpu as pltpu


def _irt_kernel(theta_ref, abc_ref, p_ref):
    theta = theta_ref[...]                           # (tm, 1)
    a_half = 0.5 * abc_ref[0:1, :]                   # (1, tn)
    b = abc_ref[1:2, :]                              # (1, tn)
    c = jnp.clip(abc_ref[2:3, :], 0.0, 1.0)          # (1, tn)  torch.clamp(c, 0, 1)
    alpha = 0.5 * (1.0 + c)                          # (1, tn)
    beta = 0.5 * (1.0 - c)                           # (1, tn)
    # sigmoid(x) == 0.5*(1 + tanh(x/2))  =>
    # c + (1-c)*sigmoid(a*(theta-b)) == alpha + beta*tanh(0.5*a*(theta-b))
    t = jnp.tanh(a_half * (theta - b))               # (tm, tn), 1 EUP op / element
    p_ref[...] = alpha + beta * t


def _cdiv(a, b):
    return (a + b - 1) // b


def _choose_tiles(num_students, num_items, max_tm, max_tn, max_block_bytes):
    """Pick (tm, tn) and padded extents with minimal padding beyond (8, 128)."""
    # Lane (items) axis: pad only to 128, split into near-equal 128-multiple tiles.
    lanes = _cdiv(num_items, 128)                    # number of 128-lane groups
    max_lane_tiles = max(1, max_tn // 128)
    nj = _cdiv(lanes, max_lane_tiles)                # number of item blocks
    tn_lanes = _cdiv(lanes, nj)
    tn = 128 * tn_lanes
    items_pad = tn * nj                              # < 128*nj cols beyond 128-pad

    # Sublane (students) axis: pad only to 8; bound tm so one output block fits
    # the per-block byte budget (double-buffered comfortably in VMEM).
    rows = _cdiv(num_students, 8)                    # number of 8-row groups
    budget_rows = max(1, (max_block_bytes // (tn * 4)) // 8)
    max_row_tiles = max(1, min(max_tm // 8, budget_rows))
    nm = _cdiv(rows, max_row_tiles)                  # number of student blocks
    tm_rows = _cdiv(rows, nm)

    # Megacore (v7x): guarantee >= 2 blocks along a "parallel" axis if possible.
    if nm * nj < 2:
        if rows >= 2:
            nm = 2
            tm_rows = _cdiv(rows, nm)
        elif lanes >= 2:
            nj = 2
            tn_lanes = _cdiv(lanes, nj)
            tn = 128 * tn_lanes
            items_pad = tn * nj

    tm = 8 * tm_rows
    students_pad = tm * nm
    return tm, tn, students_pad, items_pad, nm, nj


def three_pl_irt_forward(a, b, c, theta, *,
                         max_tn=2048, max_tm=1024, max_block_bytes=8 << 20):
    """Pallas implementation of ThreePLIrtModel.forward().

    a, b, c: (num_items,) float32
    theta:   (num_students,) float32
    returns: (num_students, num_items) float32
    """
    num_items = a.shape[0]
    num_students = theta.shape[0]

    tm, tn, students_pad, items_pad, nm, nj = _choose_tiles(
        num_students, num_items, max_tm, max_tn, max_block_bytes)

    # ---- pad inputs (padded rows/cols are sliced off only if needed) -------
    theta_p = jnp.pad(theta.astype(jnp.float32),
                      (0, students_pad - num_students)).reshape(students_pad, 1)
    abc = jnp.stack([a, b, c]).astype(jnp.float32)              # (3, num_items)
    abc_p = jnp.pad(abc, ((0, 0), (0, items_pad - num_items)))  # (3, items_pad)

    grid = (nm, nj)
    theta_spec = pl.BlockSpec((tm, 1), lambda i, j: (i, 0))
    abc_spec = pl.BlockSpec((3, tn), lambda i, j: (0, j))
    out_spec = pl.BlockSpec((tm, tn), lambda i, j: (i, j))

    # Double-buffered output + inputs (theta lane-padded to 128, abc sublane-
    # padded to 8 in VMEM), plus headroom for elementwise temps.
    vmem_needed = (2 * (tm * tn * 4)          # output blocks
                   + 2 * (tm * 128 * 4)       # theta blocks (lane-padded)
                   + 2 * (8 * tn * 4))        # fused item-param blocks
    vmem_limit = min(56 << 20, max(32 << 20, 2 * vmem_needed))

    n_elems = students_pad * items_pad
    cost = pl.CostEstimate(
        flops=5 * n_elems,
        transcendentals=n_elems,
        bytes_accessed=(n_elems * 4                 # output writeback
                        + students_pad * 4          # theta
                        + 3 * items_pad * 4),       # item params
    )

    out = pl.pallas_call(
        _irt_kernel,
        out_shape=jax.ShapeDtypeStruct((students_pad, items_pad), jnp.float32),
        grid_spec=pltpu.PrefetchScalarGridSpec(
            num_scalar_prefetch=0,
            grid=grid,
            in_specs=[theta_spec, abc_spec],
            out_specs=out_spec,
        ),
        compiler_params=pltpu.CompilerParams(
            dimension_semantics=("parallel", "parallel"),
            vmem_limit_bytes=vmem_limit,
        ),
        cost_estimate=cost,
    )(theta_p, abc_p)

    if students_pad == num_students and items_pad == num_items:
        return out                                   # no extra HBM->HBM copy
    return out[:num_students, :num_items]


def three_pl_irt_reference(a, b, c, theta):
    theta_ = theta[:, None]
    a_ = a[None, :]
    b_ = b[None, :]
    c_ = jnp.clip(c[None, :], 0.0, 1.0)
    logistic = jax.nn.sigmoid(a_ * (theta_ - b_))
    return c_ + (1.0 - c_) * logistic


if __name__ == "__main__":
    # Small, deterministic shapes; intentionally NOT tile multiples so the
    # minimal-padding + trailing-slice path is exercised.
    num_items = 1000
    num_students = 300

    # nn.Module __init__ values: a=1, b=0, c=0.2, theta=0 — plus a small
    # deterministic perturbation (PRNGKey(0)) so the broadcast/clamp paths are
    # actually exercised.
    key = jax.random.PRNGKey(0)
    ka, kb, kc, kt = jax.random.split(key, 4)
    a = jnp.ones((num_items,), jnp.float32) + 0.1 * jax.random.normal(ka, (num_items,))
    b = jnp.zeros((num_items,), jnp.float32) + 0.5 * jax.random.normal(kb, (num_items,))
    c = jnp.full((num_items,), 0.2, jnp.float32) + 0.5 * jax.random.normal(kc, (num_items,))
    theta = jnp.zeros((num_students,), jnp.float32) + jax.random.normal(kt, (num_students,))

    P = three_pl_irt_forward(a, b, c, theta)
    P = jax.block_until_ready(P)

    P_ref = three_pl_irt_reference(a, b, c, theta)
    assert P.shape == (num_students, num_items)
    # tanh-form sigmoid differs from exp-form at the ULP level -> 1e-5 tolerance.
    assert jnp.allclose(P, P_ref, atol=1e-5, rtol=1e-5), "mismatch vs reference"

    print("KERNEL_OK")
</pallas_src>

<mosaic_0001>
module attributes {stable_mosaic.version = 11 : i64} {
  func.func @_irt_kernel(%arg0: i32, %arg1: i32, %arg2: memref<152x1xf32, #tpu.memory_space<vmem>>, %arg3: memref<3x1024xf32, #tpu.memory_space<vmem>>, %arg4: memref<152x1024xf32, #tpu.memory_space<vmem>>) attributes {dimension_semantics = [#tpu.dimension_semantics<parallel>, #tpu.dimension_semantics<parallel>], iteration_bounds = array<i64: 2, 1>, scalar_prefetch = 0 : i64, scratch_operands = 0 : i64, tpu.core_type = #tpu.core_type<tc>, window_params = [{transform_indices = @transform_0, window_bounds = array<i64: 152, 1>}, {transform_indices = @transform_1, window_bounds = array<i64: 3, 1024>}, {transform_indices = @transform_2, window_bounds = array<i64: 152, 1024>}]} {
    %c0 = arith.constant 0 : index
    %c0_0 = arith.constant 0 : index
    %0 = vector.load %arg2[%c0, %c0_0] : memref<152x1xf32, #tpu.memory_space<vmem>>, vector<152x1xf32>
    %c0_1 = arith.constant 0 : index
    %c0_2 = arith.constant 0 : index
    %1 = vector.load %arg3[%c0_1, %c0_2] : memref<3x1024xf32, #tpu.memory_space<vmem>>, vector<1x1024xf32>
    %cst = arith.constant 5.000000e-01 : f32
    %2 = vector.broadcast %cst : f32 to vector<1x1024xf32>
    %3 = arith.mulf %2, %1 : vector<1x1024xf32>
    %c1 = arith.constant 1 : index
    %c0_3 = arith.constant 0 : index
    %4 = vector.load %arg3[%c1, %c0_3] : memref<3x1024xf32, #tpu.memory_space<vmem>>, vector<1x1024xf32>
    %c2 = arith.constant 2 : index
    %c0_4 = arith.constant 0 : index
    %5 = vector.load %arg3[%c2, %c0_4] : memref<3x1024xf32, #tpu.memory_space<vmem>>, vector<1x1024xf32>
    %cst_5 = arith.constant 0.000000e+00 : f32
    %cst_6 = arith.constant 1.000000e+00 : f32
    %6 = vector.broadcast %cst_5 : f32 to vector<1x1024xf32>
    %7 = arith.maximumf %6, %5 : vector<1x1024xf32>
    %8 = vector.broadcast %cst_6 : f32 to vector<1x1024xf32>
    %9 = arith.minimumf %8, %7 : vector<1x1024xf32>
    %cst_7 = arith.constant 1.000000e+00 : f32
    %10 = vector.broadcast %cst_7 : f32 to vector<1x1024xf32>
    %11 = arith.addf %10, %9 : vector<1x1024xf32>
    %cst_8 = arith.constant 5.000000e-01 : f32
    %12 = vector.broadcast %cst_8 : f32 to vector<1x1024xf32>
    %13 = arith.mulf %12, %11 : vector<1x1024xf32>
    %cst_9 = arith.constant 1.000000e+00 : f32
    %14 = vector.broadcast %cst_9 : f32 to vector<1x1024xf32>
    %15 = arith.subf %14, %9 : vector<1x1024xf32>
    %cst_10 = arith.constant 5.000000e-01 : f32
    %16 = vector.broadcast %cst_10 : f32 to vector<1x1024xf32>
    %17 = arith.mulf %16, %15 : vector<1x1024xf32>
    %18 = vector.broadcast %0 : vector<152x1xf32> to vector<152x1024xf32>
    %19 = vector.broadcast %4 : vector<1x1024xf32> to vector<152x1024xf32>
    %20 = arith.subf %18, %19 : vector<152x1024xf32>
    %21 = vector.broadcast %3 : vector<1x1024xf32> to vector<152x1024xf32>
    %22 = arith.mulf %21, %20 : vector<152x1024xf32>
    %23 = math.tanh %22 : vector<152x1024xf32>
    %24 = vector.broadcast %17 : vector<1x1024xf32> to vector<152x1024xf32>
    %25 = arith.mulf %24, %23 : vector<152x1024xf32>
    %26 = vector.broadcast %13 : vector<1x1024xf32> to vector<152x1024xf32>
    %27 = arith.addf %26, %25 : vector<152x1024xf32>
    %c0_11 = arith.constant 0 : index
    %c0_12 = arith.constant 0 : index
    %28 = vector.load %arg4[%c0_11, %c0_12] : memref<152x1024xf32, #tpu.memory_space<vmem>>, vector<152x1024xf32>
    tpu.vector_store %arg4[%c0_11, %c0_12], %27 {strides = array<i32>} : memref<152x1024xf32, #tpu.memory_space<vmem>>, vector<152x1024xf32>,
    return
  }
  func.func @transform_0(%arg0: i32, %arg1: i32) -> (i32, i32) {
    %c0_i32 = arith.constant 0 : i32
    %c0_i32_0 = arith.constant 0 : i32
    return %arg0, %c0_i32 : i32, i32
  }
  func.func @transform_1(%arg0: i32, %arg1: i32) -> (i32, i32) {
    %c0_i32 = arith.constant 0 : i32
    %c0_i32_0 = arith.constant 0 : i32
    return %c0_i32, %arg1 : i32, i32
  }
  func.func @transform_2(%arg0: i32, %arg1: i32) -> (i32, i32) {
    %c0_i32 = arith.constant 0 : i32
    return %arg0, %arg1 : i32, i32
  }
}

</mosaic_0001>

<bundles_post_ra>
// kernel: tpu_custom_call.1
= control target key start
LH: loop header
LB: loop body
LE: loop exit
PB: predicated region body
PF: predicated region fallthrough
CT: control target
= control target key end

     0   :  { %7 = vsyncpa [#allocation3], 0  ;;  %s3173_s0 = inlined_call_operand.vmem [shape: f32[304,1], index: 0, kind: input, shape index: {}]   ;;  %s3174_s1 = inlined_call_operand.hbm [shape: f32[3,1024], index: 1, kind: input, shape index: {}]   ;;  %s3175_s2 = inlined_call_operand.hbm [shape: f32[304,1024], index: 2, kind: output, shape index: {}]  }
   0x1   :  { %8 = vsyncpa [#allocation4], 0 }
   0x2   :  { %10 = vsyncpa [#allocation4 + $0x1], 0  ;;  %s2007_s9 = smov 0   ;;  %s2009_s10 = smov 0  }
   0x3   :  { %s2011_s11 = smov 0   ;;  %s2013_s12 = smov 0  }
   0x4   :  { %s2015_s13 = smov 0   ;;  %s2017_s14 = smov 0  }
   0x5 LB: > { %s1488_s15 = sadd.s32 4294967295, %s1985_s14   ;;  %s1489_s16 = sadd.s32 4294967294, %s1985_s14   ;;  %s1985_s14 = sphi %s2017_s14, %s16_s14   ;;  %s1981_s13 = sphi %s2015_s13, %s3184_s13   ;;  %s1977_s12 = sphi %s2013_s12, %s3183_s12   ;;  %s1973_s11 = sphi %s2011_s11, %s3182_s11   ;;  %s1969_s10 = sphi %s2009_s10, %s3181_s10   ;;  %s1965_s9 = sphi %s2007_s9, %s3180_s9  }
   0x6   : > { %s28_s17 = sadd.s32 1, %s1981_s13  ;;  %s89_s18 = sadd.s32 1, %s1973_s11 }
   0x7   : > { %p30_p0 = scmp.ge.s32.totalorder %s28_s17, 2  ;;  %p99_p1 = scmp.ne.s32.totalorder %s1973_s11, %s1969_s10 }
   0x8   : > { %p100_p2 = scmp.eq.s32.totalorder %s1488_s15, 1  ;;  %p105_p3 = scmp.ne.s32.totalorder %s1969_s10, %s1965_s9 }
   0x9   : > { %s3186_s17 = smov (%p30_p0, %s28_s17), 0  ;;  %p106_p5 = scmp.eq.s32.totalorder %s1489_s16, 1 }
   0xa   : > { %p2047_p4 = por %p100_p2, %p99_p1  ;;  %s84_s20 = ssub.s32 %s1981_s13, %s3186_s17 }
   0xb   : > { %p1490_p6 = scmp.ge.s32.totalorder %s1985_s14, 1  ;;  %p87_p7 = scmp.eq.s32.totalorder %s84_s20, 0 }
   0xc   : > { %p2054_p8 = por %p106_p5, %p105_p3  ;;  %p113_p9 = scmp.lt.s32.totalorder %s1985_s14, 3 }
   0xd   : > { %s2060_s22 = scalar_select %p87_p7, %s1973_s11, %s89_s18  }
   0xe   : > { %p2062_p10 = pnand %p1490_p6, %p113_p9  ;;  %p2066_p11 = scmp.eq.s32.totalorder %s1488_s15, 0 }
   0xf   : > { %s1987_s25 = smov [#allocation2]  }
  0x10   : > { %p1510_p12 = pneg %p2062_p10  ;;  %s129_s26 = sshll.u32 %s1987_s25, 4  ;;  %s130_s26 = int_to_ptr.vmem [resolvable:$true] %s129_s26 }
  0x11   : > { %s1890_s27 = scalar_lea.vmem %s130_s26, 512  ;;  %p1898_p5 = scmp.lt.s32.totalorder %s130_s26, %s130_s26 }
  0x12   : > { %p1511_p13 = pnand %p2066_p11, %p1510_p12  ;;  %p1891_p1 = scmp.ne.s32.totalorder %s130_s26, %s1890_s27 }
  0x13   : > { %p1899_p6 = scmp.lt.s32.totalorder %s1890_s27, %s1890_s27 }
  0x14   : > { %p1881_p0 = pneg %p1511_p13 }
  0x15   : > { %p1900_p7 = por %p1899_p6, %p1898_p5 }
  0x16   : > { %p1893_p2 = pnand %p1891_p1, %p1881_p0 }
  0x18   : > { %p1894_p3 = pneg %p1893_p2 }
  0x1a   : > { %p1901_p9 = pnand %p1900_p7, %p1894_p3 }
  0x1c   : > { %1904 = shalt.err (!%p1901_p9)
}
  0x1d   : > { %1513 = dma.hbm_to_vmem [thread:$0]  (!%p1511_p13), %s3174_s1, 512, %s130_s26, [#allocation3]  }
  0x1e   : > { %151 = sbr.rel (%p2062_p10) target bundleno = 384 (0x180), region = 28 }
  0x23   : > { %1956 = dma.done.wait (%p2066_p11), [#allocation3], 512  }
  0x24   : > { %1958 = vsyncadd (%p2066_p11), [#allocation3], 4294966784  ;;  %s173_s30 = smul.u32 19, %s1977_s12  ;;  %v1988_v0 = vmov 0   ;;  %v206_v20 = vld [vmem:[#allocation2 + $0x2] ss:$4 sm:$0xff]  ;;  %v309_v21 = vlaneseq }
  0x25   : > { %1574 = vset.pattern.permute.xlu1 %v1988_v0  ;;  %1573 = vset.pattern.permute.xlu0 %v1988_v0  ;;  %v207_v22 = vmax.f32 %v206_v20, 0.0  ;;  %v201_v25 = vld [vmem:[#allocation2] ss:$4 sm:$0xff]  ;;  %v204_v27 = vld [vmem:[#allocation2 + $0x1] ss:$4 sm:$0xff]  ;;  %s170_s7 = sand.u32 1, %s1969_s10  }
  0x26   : > { %p174_p12 = scmp.lt.s32.totalorder %s173_s30, 37  ;;  %v310_v23 = vshrl.u32 %v309_v21, 7  ;;  %v202_v36 = vmul.f32 0.5, %v201_v25  ;;  %s1503_s8 = smul.u32 1216, %s170_s7 }
  0x27   : > { %v208_v24 = vmin.f32 %v207_v22, 1.0  ;;  %s1502_s16 = smul.u32 19456, %s1977_s12  ;;  %s3128_s24 = scalar_lea.sflag [#allocation4], %s170_s7 }
  0x28   : > { %s3188_s30 = smov (!%p174_p12, %s173_s30), 37  ;;  %v311_v26 = vsub.s32 0, %v310_v23  ;;  %v315_v29 = vsub.s32 1, %v310_v23  ;;  %v319_v30 = vsub.s32 2, %v310_v23  ;;  %v323_v31 = vsub.s32 3, %v310_v23  ;;  %s2266_s15 = scalar_lea.vmem [#allocation5], %s1503_s8 }
  0x29   : > { %s1495_s3 = sshll.u32 %s3188_s30, 3  ;;  %v211_v28 = vsub.f32 1.0, %v208_v24  ;;  %v327_v32 = vsub.s32 4, %v310_v23  ;;  %v331_v33 = vsub.s32 5, %v310_v23  ;;  %v335_v34 = vsub.s32 6, %v310_v23  ;;  %s1401_s18 = sshll.u32 %s2266_s15, 4  ;;  %s3120_s18 = int_to_ptr.vmem [resolvable:$true] %s1401_s18 }
  0x2a   : > { %s2087_s6 = scalar_lea.vmem %s3173_s0, %s1495_s3  ;;  %v339_v35 = vsub.s32 7, %v310_v23  ;;  %v209_v37 = vadd.f32 1.0, %v208_v24  ;;  %v2108_v38 = vrot.slane %v204_v27, %v311_v26  ;;  %v2110_v40 = vrot.slane %v204_v27, %v315_v29  ;;  %s3118_s23 = scalar_lea.hbm %s3175_s2, %s1502_s16 }
  0x2b   : > { %v184_v1 = vld [vmem:[%s2087_s6 + $0x10] sm:$0xff]  ;;  %v182_v2 = vld [vmem:[%s2087_s6] sm:$0xff]  ;;  %v185_v3 = vld [vmem:[%s2087_s6 + $0x18] sm:$0xff]  ;;  %v212_v39 = vmul.f32 0.5, %v211_v28  ;;  %v2112_v41 = vrot.slane %v204_v27, %v319_v30  ;;  %v2114_v42 = vrot.slane %v204_v27, %v323_v31  ;;  %v2116_v43 = vrot.slane %v204_v27, %v327_v32  ;;  %s1905_s25 = scalar_lea.vmem %s3120_s18, 19456  ;;  %s1989_s26 = smov [#allocation5]  }
  0x2c   : > { %225 = vperm.xlu1 %1574, %v184_v1   ;;  %215 = vperm.xlu0 %1573, %v182_v2   ;;  %v183_v4 = vld [vmem:[%s2087_s6 + $0x8] sm:$0xff]  ;;  %v186_v6 = vld [vmem:[%s2087_s6 + $0x20] sm:$0xff]  ;;  %v189_v7 = vld [vmem:[%s2087_s6 + $0x38] sm:$0xff]  ;;  %v2118_v44 = vrot.slane %v204_v27, %v331_v33  ;;  %v2120_v45 = vrot.slane %v204_v27, %v335_v34  ;;  %v2122_v46 = vrot.slane %v204_v27, %v339_v35  ;;  %v210_v47 = vmul.f32 0.5, %v209_v37  ;;  %p1906_p10 = scmp.ne.s32.totalorder %s3120_s18, %s1905_s25  ;;  %s1909_s27 = sshll.u32 %s1989_s26, 4  ;;  %s1910_s27 = int_to_ptr.vmem [resolvable:$false] %s1909_s27 }
  0x2d   : > { %v187_v5 = vld [vmem:[%s2087_s6 + $0x28] sm:$0xff]  ;;  %v188_v8 = vld [vmem:[%s2087_s6 + $0x30] sm:$0xff]  ;;  %v190_v10 = vld [vmem:[%s2087_s6 + $0x40] sm:$0xff]  ;;  %v2124_v48 = vrot.slane %v202_v36, %v311_v26  ;;  %v2126_v49 = vrot.slane %v202_v36, %v315_v29  ;;  %v2128_v50 = vrot.slane %v202_v36, %v319_v30  ;;  %v2130_v51 = vrot.slane %v202_v36, %v323_v31  ;;  %s1911_s28 = scalar_lea.vmem %s1910_s27, 38912  ;;  %p1912_p0 = scmp.lt.s32.totalorder %s3120_s18, %s1910_s27 }
  0x2e   : > { %v191_v9 = vld [vmem:[%s2087_s6 + $0x48] sm:$0xff]  ;;  %v193_v11 = vld [vmem:[%s2087_s6 + $0x58] sm:$0xff]  ;;  %v192_v12 = vld [vmem:[%s2087_s6 + $0x50] sm:$0xff]  ;;  %v2132_v52 = vrot.slane %v202_v36, %v327_v32  ;;  %v2134_v53 = vrot.slane %v202_v36, %v331_v33  ;;  %v2136_v54 = vrot.slane %v202_v36, %v335_v34  ;;  %v2138_v55 = vrot.slane %v202_v36, %v339_v35  ;;  %p1907_p11 = pnand %p1906_p10, %p2047_p4  ;;  %p1913_p1 = scmp.lt.s32.totalorder %s1911_s28, %s1905_s25 }
  0x2f   : > { %v195_v13 = vld [vmem:[%s2087_s6 + $0x68] sm:$0xff]  ;;  %v194_v14 = vld [vmem:[%s2087_s6 + $0x60] sm:$0xff]  ;;  %v197_v15 = vld [vmem:[%s2087_s6 + $0x78] sm:$0xff]  ;;  %v2140_v56 = vrot.slane %v212_v39, %v311_v26  ;;  %v2142_v57 = vrot.slane %v212_v39, %v315_v29  ;;  %v2144_v58 = vrot.slane %v212_v39, %v319_v30  ;;  %v2146_v59 = vrot.slane %v212_v39, %v323_v31 }
  0x30   : > { %230 = vperm.xlu1 %1574, %v185_v3   ;;  %220 = vperm.xlu0 %1573, %v183_v4   ;;  %v196_v16 = vld [vmem:[%s2087_s6 + $0x70] sm:$0xff]  ;;  %v199_v17 = vld [vmem:[%s2087_s6 + $0x88] sm:$0xff]  ;;  %v198_v18 = vld [vmem:[%s2087_s6 + $0x80] sm:$0xff]  ;;  %v2148_v60 = vrot.slane %v212_v39, %v327_v32  ;;  %v2150_v61 = vrot.slane %v212_v39, %v331_v33  ;;  %v2152_v62 = vrot.slane %v212_v39, %v335_v34  ;;  %p1908_p13 = pneg %p1907_p11  ;;  %p1914_p2 = por %p1913_p1, %p1912_p0 }
  0x31   : > { %v200_v19 = vld [vmem:[%s2087_s6 + $0x90] sm:$0xff]  ;;  %v2154_v63 = vrot.slane %v212_v39, %v339_v35  ;;  %v2156_v0 = vrot.slane %v210_v47, %v311_v26  ;;  %v2158_v1 = vrot.slane %v210_v47, %v315_v29  ;;  %v2160_v2 = vrot.slane %v210_v47, %v319_v30 }
  0x32   : > { %v2162_v3 = vrot.slane %v210_v47, %v323_v31  ;;  %v2164_v4 = vrot.slane %v210_v47, %v327_v32  ;;  %p1915_p3 = pnand %p1914_p2, %p1908_p13 }
  0x34   : > { %240 = vperm.xlu1 %1574, %v187_v5   ;;  %235 = vperm.xlu0 %1573, %v186_v6   ;;  %v2166_v5 = vrot.slane %v210_v47, %v331_v33  ;;  %v2168_v6 = vrot.slane %v210_v47, %v335_v34 }
  0x38   : > { %250 = vperm.xlu1 %1574, %v189_v7   ;;  %245 = vperm.xlu0 %1573, %v188_v8  }
  0x3c   : > { %260 = vperm.xlu1 %1574, %v191_v9   ;;  %255 = vperm.xlu0 %1573, %v190_v10  }
  0x40   : > { %270 = vperm.xlu1 %1574, %v193_v11   ;;  %265 = vperm.xlu0 %1573, %v192_v12   ;;  %v2174_v12 = vrot.slane %v210_v47, %v339_v35 }
  0x44   : > { %280 = vperm.xlu1 %1574, %v195_v13   ;;  %275 = vperm.xlu0 %1573, %v194_v14  }
  0x48   : > { %290 = vperm.xlu1 %1574, %v197_v15   ;;  %285 = vperm.xlu0 %1573, %v196_v16  }
  0x4c   : > { %300 = vperm.xlu1 %1574, %v199_v17   ;;  %295 = vperm.xlu0 %1573, %v198_v18  }
  0x50   : > { %305 = vperm.xlu0 %1573, %v200_v19  }
  0xa7   : > { %v226_v7 = vpop.permute.xlu1 %225  ;;  %v216_v16 = vpop.permute.xlu0 %215 }
  0xa8   : > { %v365_v8 = vsub.f32 %v226_v7, %v2108_v38  ;;  %v366_v9 = vsub.f32 %v226_v7, %v2110_v40  ;;  %v367_v10 = vsub.f32 %v226_v7, %v2112_v41  ;;  %v368_v11 = vsub.f32 %v226_v7, %v2114_v42 }
  0xa9   : > { %v369_v13 = vsub.f32 %v226_v7, %v2116_v43  ;;  %v370_v14 = vsub.f32 %v226_v7, %v2118_v44  ;;  %v371_v15 = vsub.f32 %v226_v7, %v2120_v45  ;;  %v372_v17 = vsub.f32 %v226_v7, %v2122_v46 }
  0xaa   : > { %v558_v18 = vmul.f32 %v2124_v48, %v365_v8  ;;  %v559_v19 = vmul.f32 %v2126_v49, %v366_v9  ;;  %v560_v20 = vmul.f32 %v2128_v50, %v367_v10  ;;  %v561_v21 = vmul.f32 %v2130_v51, %v368_v11 }
  0xab   : > { %v562_v22 = vmul.f32 %v2132_v52, %v369_v13  ;;  %v563_v23 = vmul.f32 %v2134_v53, %v370_v14  ;;  %v564_v24 = vmul.f32 %v2136_v54, %v371_v15  ;;  %v349_v25 = vsub.f32 %v216_v16, %v2108_v38  ;;  %v231_v34 = vpop.permute.xlu1 %230 }
  0xac   : > { %1575 = vtanh.f32 %v558_v18  ;;  %v350_v26 = vsub.f32 %v216_v16, %v2110_v40  ;;  %v351_v27 = vsub.f32 %v216_v16, %v2112_v41  ;;  %v352_v28 = vsub.f32 %v216_v16, %v2114_v42  ;;  %v221_v18 = vpop.permute.xlu0 %220 }
  0xad   : > { %1577 = vtanh.f32 %v559_v19  ;;  %v353_v29 = vsub.f32 %v216_v16, %v2116_v43  ;;  %v354_v30 = vsub.f32 %v216_v16, %v2118_v44  ;;  %v565_v31 = vmul.f32 %v2138_v55, %v372_v17 }
  0xae   : > { %1579 = vtanh.f32 %v560_v20  ;;  %v355_v32 = vsub.f32 %v216_v16, %v2120_v45  ;;  %v356_v33 = vsub.f32 %v216_v16, %v2122_v46  ;;  %v542_v35 = vmul.f32 %v2124_v48, %v349_v25 }
  0xaf   : > { %1581 = vtanh.f32 %v561_v21  ;;  %v543_v36 = vmul.f32 %v2126_v49, %v350_v26  ;;  %v544_v37 = vmul.f32 %v2128_v50, %v351_v27  ;;  %v545_v39 = vmul.f32 %v2130_v51, %v352_v28 }
  0xb0   : > { %1583 = vtanh.f32 %v562_v22  ;;  %v546_v47 = vmul.f32 %v2132_v52, %v353_v29  ;;  %v547_v7 = vmul.f32 %v2134_v53, %v354_v30  ;;  %v548_v8 = vmul.f32 %v2136_v54, %v355_v32 }
  0xb1   : > { %1585 = vtanh.f32 %v563_v23  ;;  %v373_v9 = vsub.f32 %v231_v34, %v2108_v38  ;;  %v374_v10 = vsub.f32 %v231_v34, %v2110_v40  ;;  %v375_v11 = vsub.f32 %v231_v34, %v2112_v41 }
  0xb2   : > { %1587 = vtanh.f32 %v564_v24  ;;  %v376_v13 = vsub.f32 %v231_v34, %v2114_v42  ;;  %v377_v14 = vsub.f32 %v231_v34, %v2116_v43  ;;  %v549_v15 = vmul.f32 %v2138_v55, %v356_v33 }
  0xb3   : > { %1589 = vtanh.f32 %v565_v31  ;;  %v378_v16 = vsub.f32 %v231_v34, %v2118_v44  ;;  %v379_v17 = vsub.f32 %v231_v34, %v2120_v45  ;;  %v380_v19 = vsub.f32 %v231_v34, %v2122_v46 }
  0xb4   : > { %1591 = vtanh.f32 %v542_v35  ;;  %v566_v20 = vmul.f32 %v2124_v48, %v373_v9  ;;  %v567_v21 = vmul.f32 %v2126_v49, %v374_v10  ;;  %v568_v22 = vmul.f32 %v2128_v50, %v375_v11 }
  0xb5   : > { %1593 = vtanh.f32 %v543_v36  ;;  %v569_v23 = vmul.f32 %v2130_v51, %v376_v13  ;;  %v570_v24 = vmul.f32 %v2132_v52, %v377_v14  ;;  %v571_v25 = vmul.f32 %v2134_v53, %v378_v16 }
  0xb6   : > { %1595 = vtanh.f32 %v544_v37  ;;  %v2220_v26 = vmul.f32 %v2136_v54, %v379_v17  ;;  %v357_v27 = vsub.f32 %v221_v18, %v2108_v38  ;;  %v358_v28 = vsub.f32 %v221_v18, %v2110_v40 }
  0xb7   : > { %1597 = vtanh.f32 %v545_v39  ;;  %v359_v29 = vsub.f32 %v221_v18, %v2112_v41  ;;  %v360_v30 = vsub.f32 %v221_v18, %v2114_v42  ;;  %v2227_v31 = vmul.f32 %v2138_v55, %v380_v19  ;;  %v2257_v19 = vpop.permute.xlu1 %240 }
  0xb8   : > { %1599 = vtanh.f32 %v546_v47  ;;  %v361_v32 = vsub.f32 %v221_v18, %v2116_v43  ;;  %v362_v33 = vsub.f32 %v221_v18, %v2118_v44  ;;  %v363_v35 = vsub.f32 %v221_v18, %v2120_v45 }
  0xb9   : > { %v1576_v34 = vpop.eup %1575  ;;  %1601 = vtanh.f32 %v547_v7  ;;  %v364_v36 = vsub.f32 %v221_v18, %v2122_v46  ;;  %v2236_v37 = vmul.f32 %v2124_v48, %v357_v27  ;;  %v2240_v9 = vmul.f32 %v2126_v49, %v358_v28 }
  0xba   : > { %v1578_v39 = vpop.eup %1577  ;;  %v903_v47 = vmul.f32 %v1576_v34, %v2140_v56  ;;  %1603 = vtanh.f32 %v548_v8  ;;  %v2243_v10 = vmul.f32 %v2128_v50, %v359_v29  ;;  %v2247_v13 = vmul.f32 %v2130_v51, %v360_v30 }
  0xbb   : > { %v1580_v11 = vpop.eup %1579  ;;  %v904_v7 = vmul.f32 %v1578_v39, %v2142_v57  ;;  %1605 = vtanh.f32 %v549_v15  ;;  %v2250_v14 = vmul.f32 %v2132_v52, %v361_v32  ;;  %v2255_v18 = vmul.f32 %v2134_v53, %v362_v33 }
  0xbc   : > { %v1582_v16 = vpop.eup %1581  ;;  %v905_v17 = vmul.f32 %v1580_v11, %v2144_v58  ;;  %v1096_v8 = vadd.f32 %v2156_v0, %v903_v47  ;;  %1607 = vtanh.f32 %v566_v20  ;;  %v2262_v29 = vmul.f32 %v2136_v54, %v363_v35 }
  0xbd   : > { %v1584_v27 = vpop.eup %1583  ;;  %v906_v15 = vmul.f32 %v1582_v16, %v2146_v59  ;;  %v1097_v28 = vadd.f32 %v2158_v1, %v904_v7  ;;  %1609 = vtanh.f32 %v567_v21  ;;  %v2270_v20 = vmul.f32 %v2138_v55, %v364_v36 }
  0xbe   : > { %v1586_v30 = vpop.eup %1585  ;;  %v907_v32 = vmul.f32 %v1584_v27, %v2148_v60  ;;  %v1098_v34 = vadd.f32 %v2160_v2, %v905_v17  ;;  %1248 = vst [vmem:[%s2266_s15 + $0x80] sm:$0xff] %v1096_v8  ;;  %1611 = vtanh.f32 %v568_v22  ;;  %v389_v39 = vsub.f32 %v2257_v19, %v2108_v38 }
  0xbf   : > { %v1588_v21 = vpop.eup %1587  ;;  %v908_v33 = vmul.f32 %v1586_v30, %v2150_v61  ;;  %v1099_v35 = vadd.f32 %v2162_v3, %v906_v15  ;;  %1249 = vst [vmem:[%s2266_s15 + $0x88] sm:$0xff] %v1097_v28  ;;  %1613 = vtanh.f32 %v569_v23  ;;  %v390_v36 = vsub.f32 %v2257_v19, %v2110_v40 }
  0xc0   : > { %v1590_v47 = vpop.eup %1589  ;;  %v909_v11 = vmul.f32 %v1588_v21, %v2152_v62  ;;  %v1100_v22 = vadd.f32 %v2164_v4, %v907_v32  ;;  %1250 = vst [vmem:[%s2266_s15 + $0x90] sm:$0xff] %v1098_v34  ;;  %1615 = vtanh.f32 %v570_v24  ;;  %v391_v17 = vsub.f32 %v2257_v19, %v2112_v41 }
  0xc1   : > { %v1592_v7 = vpop.eup %1591  ;;  %v910_v16 = vmul.f32 %v1590_v47, %v2154_v63  ;;  %v1101_v23 = vadd.f32 %v2166_v5, %v908_v33  ;;  %1251 = vst [vmem:[%s2266_s15 + $0x98] sm:$0xff] %v1099_v35  ;;  %1617 = vtanh.f32 %v571_v25  ;;  %v392_v15 = vsub.f32 %v2257_v19, %v2114_v42 }
  0xc2   : > { %v1594_v8 = vpop.eup %1593  ;;  %v1102_v27 = vadd.f32 %v2168_v6, %v909_v11  ;;  %1252 = vst [vmem:[%s2266_s15 + $0xa0] sm:$0xff] %v1100_v22  ;;  %v887_v24 = vmul.f32 %v1592_v7, %v2140_v56  ;;  %1619 = vtanh.f32 %v2220_v26  ;;  %v393_v32 = vsub.f32 %v2257_v19, %v2116_v43 }
  0xc3   : > { %v1596_v28 = vpop.eup %1595  ;;  %v1103_v30 = vadd.f32 %v2174_v12, %v910_v16  ;;  %1253 = vst [vmem:[%s2266_s15 + $0xa8] sm:$0xff] %v1101_v23  ;;  %v888_v25 = vmul.f32 %v1594_v8, %v2142_v57  ;;  %1621 = vtanh.f32 %v2227_v31  ;;  %v394_v33 = vsub.f32 %v2257_v19, %v2118_v44 }
  0xc4   : > { %v1598_v34 = vpop.eup %1597  ;;  %1254 = vst [vmem:[%s2266_s15 + $0xb0] sm:$0xff] %v1102_v27  ;;  %v889_v21 = vmul.f32 %v1596_v28, %v2144_v58  ;;  %v1080_v26 = vadd.f32 %v2156_v0, %v887_v24  ;;  %1623 = vtanh.f32 %v2236_v37  ;;  %v395_v11 = vsub.f32 %v2257_v19, %v2120_v45 }
  0xc5   : > { %v1600_v35 = vpop.eup %1599  ;;  %1255 = vst [vmem:[%s2266_s15 + $0xb8] sm:$0xff] %v1103_v30  ;;  %v890_v31 = vmul.f32 %v1598_v34, %v2146_v59  ;;  %v1081_v47 = vadd.f32 %v2158_v1, %v888_v25  ;;  %1625 = vtanh.f32 %v2240_v9  ;;  %v396_v16 = vsub.f32 %v2257_v19, %v2122_v46 }
  0xc6   : > { %v1602_v22 = vpop.eup %1601  ;;  %v891_v7 = vmul.f32 %v1600_v35, %v2148_v60  ;;  %v1082_v37 = vadd.f32 %v2160_v2, %v889_v21  ;;  %1232 = vst [vmem:[%s2266_s15] sm:$0xff] %v1080_v26  ;;  %1627 = vtanh.f32 %v2243_v10  ;;  %v582_v27 = vmul.f32 %v2124_v48, %v389_v39 }
  0xc7   : > { %v1604_v23 = vpop.eup %1603  ;;  %v892_v8 = vmul.f32 %v1602_v22, %v2150_v61  ;;  %v1083_v9 = vadd.f32 %v2162_v3, %v890_v31  ;;  %1233 = vst [vmem:[%s2266_s15 + $0x8] sm:$0xff] %v1081_v47  ;;  %1629 = vtanh.f32 %v2247_v13  ;;  %v583_v19 = vmul.f32 %v2126_v49, %v390_v36  ;;  %v2342_v31 = vpop.permute.xlu0 %235 }
  0xc8   : > { %v1606_v24 = vpop.eup %1605  ;;  %v893_v28 = vmul.f32 %v1604_v23, %v2152_v62  ;;  %v1084_v10 = vadd.f32 %v2164_v4, %v891_v7  ;;  %1234 = vst [vmem:[%s2266_s15 + $0x10] sm:$0xff] %v1082_v37  ;;  %1631 = vtanh.f32 %v2250_v14  ;;  %v584_v13 = vmul.f32 %v2128_v50, %v391_v17 }
  0xc9   : > { %v1608_v30 = vpop.eup %1607  ;;  %v894_v25 = vmul.f32 %v1606_v24, %v2154_v63  ;;  %v1085_v34 = vadd.f32 %v2166_v5, %v892_v8  ;;  %1235 = vst [vmem:[%s2266_s15 + $0x18] sm:$0xff] %v1083_v9  ;;  %1633 = vtanh.f32 %v2255_v18  ;;  %v585_v36 = vmul.f32 %v2130_v51, %v392_v15 }
  0xca   : > { %v1610_v39 = vpop.eup %1609  ;;  %v1086_v21 = vadd.f32 %v2168_v6, %v893_v28  ;;  %1236 = vst [vmem:[%s2266_s15 + $0x20] sm:$0xff] %v1084_v10  ;;  %v911_v14 = vmul.f32 %v1608_v30, %v2140_v56  ;;  %1635 = vtanh.f32 %v2262_v29  ;;  %v586_v17 = vmul.f32 %v2132_v52, %v393_v32 }
  0xcb   : > { %v1612_v26 = vpop.eup %1611  ;;  %v1087_v35 = vadd.f32 %v2174_v12, %v894_v25  ;;  %1237 = vst [vmem:[%s2266_s15 + $0x28] sm:$0xff] %v1085_v34  ;;  %v912_v18 = vmul.f32 %v1610_v39, %v2142_v57  ;;  %1637 = vtanh.f32 %v2270_v20  ;;  %v587_v15 = vmul.f32 %v2134_v53, %v394_v33 }
  0xcc   : > { %v1614_v47 = vpop.eup %1613  ;;  %1238 = vst [vmem:[%s2266_s15 + $0x30] sm:$0xff] %v1086_v21  ;;  %v913_v29 = vmul.f32 %v1612_v26, %v2144_v58  ;;  %v1104_v22 = vadd.f32 %v2156_v0, %v911_v14  ;;  %v588_v7 = vmul.f32 %v2136_v54, %v395_v11  ;;  %v589_v23 = vmul.f32 %v2138_v55, %v396_v16 }
  0xcd   : > { %v1616_v37 = vpop.eup %1615  ;;  %1239 = vst [vmem:[%s2266_s15 + $0x38] sm:$0xff] %v1087_v35  ;;  %v914_v20 = vmul.f32 %v1614_v47, %v2146_v59  ;;  %v1105_v32 = vadd.f32 %v2158_v1, %v912_v18  ;;  %1639 = vtanh.f32 %v582_v27  ;;  %v381_v33 = vsub.f32 %v2342_v31, %v2108_v38 }
  0xce   : > { %v1618_v8 = vpop.eup %1617  ;;  %v915_v9 = vmul.f32 %v1616_v37, %v2148_v60  ;;  %v1106_v24 = vadd.f32 %v2160_v2, %v913_v29  ;;  %1256 = vst [vmem:[%s2266_s15 + $0xc0] sm:$0xff] %v1104_v22  ;;  %1641 = vtanh.f32 %v583_v19  ;;  %v382_v16 = vsub.f32 %v2342_v31, %v2110_v40 }
  0xcf   : > { %v1620_v11 = vpop.eup %1619  ;;  %v916_v28 = vmul.f32 %v1618_v8, %v2150_v61  ;;  %v1107_v10 = vadd.f32 %v2162_v3, %v914_v20  ;;  %1257 = vst [vmem:[%s2266_s15 + $0xc8] sm:$0xff] %v1105_v32  ;;  %1643 = vtanh.f32 %v584_v13  ;;  %v383_v25 = vsub.f32 %v2342_v31, %v2112_v41 }
  0xd0   : > { %v1622_v27 = vpop.eup %1621  ;;  %v917_v30 = vmul.f32 %v1620_v11, %v2152_v62  ;;  %v1108_v19 = vadd.f32 %v2164_v4, %v915_v9  ;;  %1258 = vst [vmem:[%s2266_s15 + $0xd0] sm:$0xff] %v1106_v24  ;;  %1645 = vtanh.f32 %v585_v36  ;;  %v384_v21 = vsub.f32 %v2342_v31, %v2114_v42 }
  0xd1   : > { %v1624_v34 = vpop.eup %1623  ;;  %v918_v39 = vmul.f32 %v1622_v27, %v2154_v63  ;;  %v1109_v13 = vadd.f32 %v2166_v5, %v916_v28  ;;  %1259 = vst [vmem:[%s2266_s15 + $0xd8] sm:$0xff] %v1107_v10  ;;  %1647 = vtanh.f32 %v586_v17  ;;  %v385_v35 = vsub.f32 %v2342_v31, %v2116_v43 }
  0xd2   : > { %v1626_v14 = vpop.eup %1625  ;;  %v1110_v26 = vadd.f32 %v2168_v6, %v917_v30  ;;  %1260 = vst [vmem:[%s2266_s15 + $0xe0] sm:$0xff] %v1108_v19  ;;  %v895_v36 = vmul.f32 %v1624_v34, %v2140_v56  ;;  %1649 = vtanh.f32 %v587_v15  ;;  %v386_v29 = vsub.f32 %v2342_v31, %v2118_v44 }
  0xd3   : > { %v1628_v18 = vpop.eup %1627  ;;  %v1111_v47 = vadd.f32 %v2174_v12, %v918_v39  ;;  %1261 = vst [vmem:[%s2266_s15 + $0xe8] sm:$0xff] %v1109_v13  ;;  %v896_v17 = vmul.f32 %v1626_v14, %v2142_v57  ;;  %1651 = vtanh.f32 %v588_v7  ;;  %v387_v20 = vsub.f32 %v2342_v31, %v2120_v45  ;;  %v2404_v39 = vpop.permute.xlu1 %250 }
  0xd4   : > { %v1630_v22 = vpop.eup %1629  ;;  %1262 = vst [vmem:[%s2266_s15 + $0xf0] sm:$0xff] %v1110_v26  ;;  %v897_v37 = vmul.f32 %v1628_v18, %v2144_v58  ;;  %v1088_v15 = vadd.f32 %v2156_v0, %v895_v36  ;;  %1653 = vtanh.f32 %v589_v23  ;;  %v388_v9 = vsub.f32 %v2342_v31, %v2122_v46 }
  0xd5   : > { %v1632_v32 = vpop.eup %1631  ;;  %1263 = vst [vmem:[%s2266_s15 + $0xf8] sm:$0xff] %v1111_v47  ;;  %v898_v8 = vmul.f32 %v1630_v22, %v2146_v59  ;;  %v1089_v7 = vadd.f32 %v2158_v1, %v896_v17  ;;  %v574_v24 = vmul.f32 %v2124_v48, %v381_v33  ;;  %v575_v10 = vmul.f32 %v2126_v49, %v382_v16 }
  0xd6   : > { %v1634_v11 = vpop.eup %1633  ;;  %v899_v28 = vmul.f32 %v1632_v32, %v2148_v60  ;;  %v1090_v23 = vadd.f32 %v2160_v2, %v897_v37  ;;  %1240 = vst [vmem:[%s2266_s15 + $0x40] sm:$0xff] %v1088_v15  ;;  %v576_v27 = vmul.f32 %v2128_v50, %v383_v25  ;;  %v577_v31 = vmul.f32 %v2130_v51, %v384_v21 }
  0xd7   : > { %v1636_v30 = vpop.eup %1635  ;;  %v900_v19 = vmul.f32 %v1634_v11, %v2150_v61  ;;  %v1091_v34 = vadd.f32 %v2162_v3, %v898_v8  ;;  %1241 = vst [vmem:[%s2266_s15 + $0x48] sm:$0xff] %v1089_v7  ;;  %v578_v33 = vmul.f32 %v2132_v52, %v385_v35  ;;  %v579_v25 = vmul.f32 %v2134_v53, %v386_v29 }
  0xd8   : > { %v1638_v13 = vpop.eup %1637  ;;  %v901_v14 = vmul.f32 %v1636_v30, %v2152_v62  ;;  %v1092_v16 = vadd.f32 %v2164_v4, %v899_v28  ;;  %1242 = vst [vmem:[%s2266_s15 + $0x50] sm:$0xff] %v1090_v23  ;;  %v580_v26 = vmul.f32 %v2136_v54, %v387_v20  ;;  %v581_v35 = vmul.f32 %v2138_v55, %v388_v9 }
  0xd9   : > { %v902_v36 = vmul.f32 %v1638_v13, %v2154_v63  ;;  %v1093_v21 = vadd.f32 %v2166_v5, %v900_v19  ;;  %1243 = vst [vmem:[%s2266_s15 + $0x58] sm:$0xff] %v1091_v34  ;;  %1655 = vtanh.f32 %v574_v24  ;;  %v405_v17 = vsub.f32 %v2404_v39, %v2108_v38 }
  0xda   : > { %v1640_v18 = vpop.eup %1639  ;;  %v1094_v47 = vadd.f32 %v2168_v6, %v901_v14  ;;  %1244 = vst [vmem:[%s2266_s15 + $0x60] sm:$0xff] %v1092_v16  ;;  %1657 = vtanh.f32 %v575_v10  ;;  %v406_v29 = vsub.f32 %v2404_v39, %v2110_v40  ;;  %v407_v20 = vsub.f32 %v2404_v39, %v2112_v41 }
  0xdb   : > { %v1642_v22 = vpop.eup %1641  ;;  %v1095_v37 = vadd.f32 %v2174_v12, %v902_v36  ;;  %1245 = vst [vmem:[%s2266_s15 + $0x68] sm:$0xff] %v1093_v21  ;;  %v927_v15 = vmul.f32 %v1640_v18, %v2140_v56  ;;  %1659 = vtanh.f32 %v576_v27  ;;  %v408_v7 = vsub.f32 %v2404_v39, %v2114_v42 }
  0xdc   : > { %v1644_v32 = vpop.eup %1643  ;;  %1246 = vst [vmem:[%s2266_s15 + $0x70] sm:$0xff] %v1094_v47  ;;  %v928_v8 = vmul.f32 %v1642_v22, %v2142_v57  ;;  %1661 = vtanh.f32 %v577_v31  ;;  %v409_v9 = vsub.f32 %v2404_v39, %v2116_v43  ;;  %v410_v23 = vsub.f32 %v2404_v39, %v2118_v44  ;;  %v2455_v22 = vpop.permute.xlu0 %245 }
  0xdd   : > { %v1646_v24 = vpop.eup %1645  ;;  %1247 = vst [vmem:[%s2266_s15 + $0x78] sm:$0xff] %v1095_v37  ;;  %v929_v11 = vmul.f32 %v1644_v32, %v2144_v58  ;;  %v1120_v28 = vadd.f32 %v2156_v0, %v927_v15  ;;  %1663 = vtanh.f32 %v578_v33  ;;  %v411_v19 = vsub.f32 %v2404_v39, %v2120_v45 }
  0xde   : > { %v1648_v10 = vpop.eup %1647  ;;  %v930_v27 = vmul.f32 %v1646_v24, %v2146_v59  ;;  %v1121_v30 = vadd.f32 %v2158_v1, %v928_v8  ;;  %1665 = vtanh.f32 %v579_v25  ;;  %v598_v33 = vmul.f32 %v2124_v48, %v405_v17 }
  0xdf   : > { %v1650_v34 = vpop.eup %1649  ;;  %v931_v31 = vmul.f32 %v1648_v10, %v2148_v60  ;;  %v1122_v13 = vadd.f32 %v2160_v2, %v929_v11  ;;  %1272 = vst [vmem:[%s2266_s15 + $0x140] sm:$0xff] %v1120_v28  ;;  %1667 = vtanh.f32 %v580_v26  ;;  %v599_v25 = vmul.f32 %v2126_v49, %v406_v29 }
  0xe0   : > { %v1652_v14 = vpop.eup %1651  ;;  %v932_v16 = vmul.f32 %v1650_v34, %v2150_v61  ;;  %v1123_v36 = vadd.f32 %v2162_v3, %v930_v27  ;;  %1273 = vst [vmem:[%s2266_s15 + $0x148] sm:$0xff] %v1121_v30  ;;  %1669 = vtanh.f32 %v581_v35  ;;  %v412_v26 = vsub.f32 %v2404_v39, %v2122_v46 }
  0xe1   : > { %v1654_v21 = vpop.eup %1653  ;;  %v933_v18 = vmul.f32 %v1652_v14, %v2152_v62  ;;  %v1124_v47 = vadd.f32 %v2164_v4, %v931_v31  ;;  %1274 = vst [vmem:[%s2266_s15 + $0x150] sm:$0xff] %v1122_v13  ;;  %v600_v17 = vmul.f32 %v2128_v50, %v407_v20  ;;  %v601_v29 = vmul.f32 %v2130_v51, %v408_v7 }
  0xe2   : > { %v934_v37 = vmul.f32 %v1654_v21, %v2154_v63  ;;  %v1125_v35 = vadd.f32 %v2166_v5, %v932_v16  ;;  %1275 = vst [vmem:[%s2266_s15 + $0x158] sm:$0xff] %v1123_v36  ;;  %v602_v32 = vmul.f32 %v2132_v52, %v409_v9  ;;  %v603_v39 = vmul.f32 %v2134_v53, %v410_v23 }
  0xe3   : > { %v1126_v15 = vadd.f32 %v2168_v6, %v933_v18  ;;  %1276 = vst [vmem:[%s2266_s15 + $0x160] sm:$0xff] %v1124_v47  ;;  %1671 = vtanh.f32 %v598_v33  ;;  %v397_v8 = vsub.f32 %v2455_v22, %v2108_v38  ;;  %v398_v24 = vsub.f32 %v2455_v22, %v2110_v40 }
  0xe4   : > { %v1127_v20 = vadd.f32 %v2174_v12, %v934_v37  ;;  %1277 = vst [vmem:[%s2266_s15 + $0x168] sm:$0xff] %v1125_v35  ;;  %1673 = vtanh.f32 %v599_v25  ;;  %v604_v7 = vmul.f32 %v2136_v54, %v411_v19  ;;  %v605_v11 = vmul.f32 %v2138_v55, %v412_v26 }
  0xe5   : > { %1278 = vst [vmem:[%s2266_s15 + $0x170] sm:$0xff] %v1126_v15  ;;  %1675 = vtanh.f32 %v600_v17  ;;  %v399_v9 = vsub.f32 %v2455_v22, %v2112_v41  ;;  %v400_v23 = vsub.f32 %v2455_v22, %v2114_v42  ;;  %v401_v10 = vsub.f32 %v2455_v22, %v2116_v43 }
  0xe6   : > { %v1656_v28 = vpop.eup %1655  ;;  %1279 = vst [vmem:[%s2266_s15 + $0x178] sm:$0xff] %v1127_v20  ;;  %1677 = vtanh.f32 %v601_v29  ;;  %v402_v27 = vsub.f32 %v2455_v22, %v2118_v44  ;;  %v403_v34 = vsub.f32 %v2455_v22, %v2120_v45  ;;  %v404_v31 = vsub.f32 %v2455_v22, %v2122_v46 }
  0xe7   : > { %v1658_v30 = vpop.eup %1657  ;;  %v919_v19 = vmul.f32 %v1656_v28, %v2140_v56  ;;  %1679 = vtanh.f32 %v602_v32  ;;  %v590_v14 = vmul.f32 %v2124_v48, %v397_v8  ;;  %v591_v16 = vmul.f32 %v2126_v49, %v398_v24 }
  0xe8   : > { %v1660_v13 = vpop.eup %1659  ;;  %v920_v33 = vmul.f32 %v1658_v30, %v2142_v57  ;;  %1681 = vtanh.f32 %v603_v39  ;;  %v592_v18 = vmul.f32 %v2128_v50, %v399_v9  ;;  %v593_v22 = vmul.f32 %v2130_v51, %v400_v23  ;;  %v2502_v39 = vpop.permute.xlu1 %260 }
  0xe9   : > { %v1662_v36 = vpop.eup %1661  ;;  %v921_v25 = vmul.f32 %v1660_v13, %v2144_v58  ;;  %v1112_v21 = vadd.f32 %v2156_v0, %v919_v19  ;;  %1683 = vtanh.f32 %v604_v7  ;;  %v594_v15 = vmul.f32 %v2132_v52, %v401_v10 }
  0xea   : > { %v1664_v47 = vpop.eup %1663  ;;  %v922_v26 = vmul.f32 %v1662_v36, %v2146_v59  ;;  %v1113_v17 = vadd.f32 %v2158_v1, %v920_v33  ;;  %1685 = vtanh.f32 %v605_v11  ;;  %v595_v32 = vmul.f32 %v2134_v53, %v402_v27 }
  0xeb   : > { %v1666_v37 = vpop.eup %1665  ;;  %v923_v35 = vmul.f32 %v1664_v47, %v2148_v60  ;;  %v1114_v29 = vadd.f32 %v2160_v2, %v921_v25  ;;  %1264 = vst [vmem:[%s2266_s15 + $0x100] sm:$0xff] %v1112_v21  ;;  %v596_v7 = vmul.f32 %v2136_v54, %v403_v34  ;;  %1687 = vtanh.f32 %v590_v14 }
  0xec   : > { %v1668_v20 = vpop.eup %1667  ;;  %v924_v8 = vmul.f32 %v1666_v37, %v2150_v61  ;;  %v1115_v24 = vadd.f32 %v2162_v3, %v922_v26  ;;  %1265 = vst [vmem:[%s2266_s15 + $0x108] sm:$0xff] %v1113_v17  ;;  %v597_v23 = vmul.f32 %v2138_v55, %v404_v31  ;;  %1689 = vtanh.f32 %v591_v16 }
  0xed   : > { %v1670_v11 = vpop.eup %1669  ;;  %v925_v9 = vmul.f32 %v1668_v20, %v2152_v62  ;;  %v1116_v28 = vadd.f32 %v2164_v4, %v923_v35  ;;  %1266 = vst [vmem:[%s2266_s15 + $0x110] sm:$0xff] %v1114_v29  ;;  %1691 = vtanh.f32 %v592_v18  ;;  %v421_v30 = vsub.f32 %v2502_v39, %v2108_v38 }
  0xee   : > { %v926_v10 = vmul.f32 %v1670_v11, %v2154_v63  ;;  %v1117_v27 = vadd.f32 %v2166_v5, %v924_v8  ;;  %1267 = vst [vmem:[%s2266_s15 + $0x118] sm:$0xff] %v1115_v24  ;;  %1693 = vtanh.f32 %v593_v22  ;;  %v422_v34 = vsub.f32 %v2502_v39, %v2110_v40 }
  0xef   : > { %v1118_v19 = vadd.f32 %v2168_v6, %v925_v9  ;;  %1268 = vst [vmem:[%s2266_s15 + $0x120] sm:$0xff] %v1116_v28  ;;  %v423_v31 = vsub.f32 %v2502_v39, %v2112_v41  ;;  %1695 = vtanh.f32 %v594_v15  ;;  %v424_v14 = vsub.f32 %v2502_v39, %v2114_v42 }
  0xf0   : > { %v1672_v13 = vpop.eup %1671  ;;  %v1119_v33 = vadd.f32 %v2174_v12, %v926_v10  ;;  %1269 = vst [vmem:[%s2266_s15 + $0x128] sm:$0xff] %v1117_v27  ;;  %v425_v16 = vsub.f32 %v2502_v39, %v2116_v43  ;;  %1697 = vtanh.f32 %v595_v32  ;;  %v426_v21 = vsub.f32 %v2502_v39, %v2118_v44  ;;  %v2552_v10 = vpop.permute.xlu0 %255 }
  0xf1   : > { %v1674_v36 = vpop.eup %1673  ;;  %1270 = vst [vmem:[%s2266_s15 + $0x130] sm:$0xff] %v1118_v19  ;;  %v943_v25 = vmul.f32 %v1672_v13, %v2140_v56  ;;  %v427_v18 = vsub.f32 %v2502_v39, %v2120_v45  ;;  %1699 = vtanh.f32 %v596_v7  ;;  %v428_v17 = vsub.f32 %v2502_v39, %v2122_v46 }
  0xf2   : > { %v1676_v47 = vpop.eup %1675  ;;  %1271 = vst [vmem:[%s2266_s15 + $0x138] sm:$0xff] %v1119_v33  ;;  %v944_v26 = vmul.f32 %v1674_v36, %v2142_v57  ;;  %v614_v22 = vmul.f32 %v2124_v48, %v421_v30  ;;  %1701 = vtanh.f32 %v597_v23  ;;  %v615_v15 = vmul.f32 %v2126_v49, %v422_v34 }
  0xf3   : > { %v1678_v37 = vpop.eup %1677  ;;  %v945_v35 = vmul.f32 %v1676_v47, %v2144_v58  ;;  %v1136_v29 = vadd.f32 %v2156_v0, %v943_v25  ;;  %v616_v24 = vmul.f32 %v2128_v50, %v423_v31  ;;  %v617_v39 = vmul.f32 %v2130_v51, %v424_v14 }
  0xf4   : > { %v1680_v32 = vpop.eup %1679  ;;  %v946_v20 = vmul.f32 %v1678_v37, %v2146_v59  ;;  %v1137_v8 = vadd.f32 %v2158_v1, %v944_v26  ;;  %v618_v28 = vmul.f32 %v2132_v52, %v425_v16  ;;  %v619_v23 = vmul.f32 %v2134_v53, %v426_v21 }
  0xf5   : > { %v1682_v7 = vpop.eup %1681  ;;  %v947_v11 = vmul.f32 %v1680_v32, %v2148_v60  ;;  %v1138_v9 = vadd.f32 %v2160_v2, %v945_v35  ;;  %1288 = vst [vmem:[%s2266_s15 + $0x1c0] sm:$0xff] %v1136_v29  ;;  %v620_v34 = vmul.f32 %v2136_v54, %v427_v18  ;;  %1703 = vtanh.f32 %v614_v22 }
  0xf6   : > { %v1684_v27 = vpop.eup %1683  ;;  %v948_v30 = vmul.f32 %v1682_v7, %v2150_v61  ;;  %v1139_v19 = vadd.f32 %v2162_v3, %v946_v20  ;;  %1289 = vst [vmem:[%s2266_s15 + $0x1c8] sm:$0xff] %v1137_v8  ;;  %v621_v14 = vmul.f32 %v2138_v55, %v428_v17  ;;  %1705 = vtanh.f32 %v615_v15 }
  0xf7   : > { %v1686_v31 = vpop.eup %1685  ;;  %v949_v13 = vmul.f32 %v1684_v27, %v2152_v62  ;;  %v1140_v33 = vadd.f32 %v2164_v4, %v947_v11  ;;  %1290 = vst [vmem:[%s2266_s15 + $0x1d0] sm:$0xff] %v1138_v9  ;;  %1707 = vtanh.f32 %v616_v24  ;;  %v413_v25 = vsub.f32 %v2552_v10, %v2108_v38 }
  0xf8   : > { %v950_v16 = vmul.f32 %v1686_v31, %v2154_v63  ;;  %v1141_v36 = vadd.f32 %v2166_v5, %v948_v30  ;;  %1291 = vst [vmem:[%s2266_s15 + $0x1d8] sm:$0xff] %v1139_v19  ;;  %v1688_v21 = vpop.eup %1687  ;;  %1709 = vtanh.f32 %v617_v39  ;;  %v414_v47 = vsub.f32 %v2552_v10, %v2110_v40 }
  0xf9   : > { %v1142_v18 = vadd.f32 %v2168_v6, %v949_v13  ;;  %1292 = vst [vmem:[%s2266_s15 + $0x1e0] sm:$0xff] %v1140_v33  ;;  %v415_v26 = vsub.f32 %v2552_v10, %v2112_v41  ;;  %v1690_v17 = vpop.eup %1689  ;;  %v935_v37 = vmul.f32 %v1688_v21, %v2140_v56  ;;  %1711 = vtanh.f32 %v618_v28 }
  0xfa   : > { %v1143_v22 = vadd.f32 %v2174_v12, %v950_v16  ;;  %1293 = vst [vmem:[%s2266_s15 + $0x1e8] sm:$0xff] %v1141_v36  ;;  %v416_v35 = vsub.f32 %v2552_v10, %v2114_v42  ;;  %v1692_v29 = vpop.eup %1691  ;;  %v936_v15 = vmul.f32 %v1690_v17, %v2142_v57  ;;  %1713 = vtanh.f32 %v619_v23 }
  0xfb   : > { %1294 = vst [vmem:[%s2266_s15 + $0x1f0] sm:$0xff] %v1142_v18  ;;  %v417_v32 = vsub.f32 %v2552_v10, %v2116_v43  ;;  %v418_v20 = vsub.f32 %v2552_v10, %v2118_v44  ;;  %v1694_v8 = vpop.eup %1693  ;;  %v937_v24 = vmul.f32 %v1692_v29, %v2144_v58  ;;  %v1128_v39 = vadd.f32 %v2156_v0, %v935_v37 }
  0xfc   : > { %1295 = vst [vmem:[%s2266_s15 + $0x1f8] sm:$0xff] %v1143_v22  ;;  %1715 = vtanh.f32 %v620_v34  ;;  %v419_v7 = vsub.f32 %v2552_v10, %v2120_v45  ;;  %v1696_v11 = vpop.eup %1695  ;;  %v938_v9 = vmul.f32 %v1694_v8, %v2146_v59  ;;  %v1129_v28 = vadd.f32 %v2158_v1, %v936_v15 }
  0xfd   : > { %1717 = vtanh.f32 %v621_v14  ;;  %v606_v23 = vmul.f32 %v2124_v48, %v413_v25  ;;  %v1698_v27 = vpop.eup %1697  ;;  %v939_v30 = vmul.f32 %v1696_v11, %v2148_v60  ;;  %v1130_v19 = vadd.f32 %v2160_v2, %v937_v24  ;;  %1280 = vst [vmem:[%s2266_s15 + $0x180] sm:$0xff] %v1128_v39  ;;  %v2603_v25 = vpop.permute.xlu1 %270 }
  0xfe   : > { %v420_v34 = vsub.f32 %v2552_v10, %v2122_v46  ;;  %v607_v31 = vmul.f32 %v2126_v49, %v414_v47  ;;  %v1700_v13 = vpop.eup %1699  ;;  %v940_v33 = vmul.f32 %v1698_v27, %v2150_v61  ;;  %v1131_v14 = vadd.f32 %v2162_v3, %v938_v9  ;;  %1281 = vst [vmem:[%s2266_s15 + $0x188] sm:$0xff] %v1129_v28 }
  0xff   : > { %v608_v16 = vmul.f32 %v2128_v50, %v415_v26  ;;  %v609_v36 = vmul.f32 %v2130_v51, %v416_v35  ;;  %v1702_v21 = vpop.eup %1701  ;;  %v941_v18 = vmul.f32 %v1700_v13, %v2152_v62  ;;  %v1132_v10 = vadd.f32 %v2164_v4, %v939_v30  ;;  %1282 = vst [vmem:[%s2266_s15 + $0x190] sm:$0xff] %v1130_v19 }
 0x100   : > { %v610_v47 = vmul.f32 %v2132_v52, %v417_v32  ;;  %v611_v17 = vmul.f32 %v2134_v53, %v418_v20  ;;  %v942_v22 = vmul.f32 %v1702_v21, %v2154_v63  ;;  %v1133_v37 = vadd.f32 %v2166_v5, %v940_v33  ;;  %1283 = vst [vmem:[%s2266_s15 + $0x198] sm:$0xff] %v1131_v14 }
 0x101   : > { %v612_v26 = vmul.f32 %v2136_v54, %v419_v7  ;;  %1719 = vtanh.f32 %v606_v23  ;;  %v1134_v35 = vadd.f32 %v2168_v6, %v941_v18  ;;  %1284 = vst [vmem:[%s2266_s15 + $0x1a0] sm:$0xff] %v1132_v10  ;;  %v613_v29 = vmul.f32 %v2138_v55, %v420_v34 }
 0x102   : > { %1721 = vtanh.f32 %v607_v31  ;;  %v437_v15 = vsub.f32 %v2603_v25, %v2108_v38  ;;  %v1704_v32 = vpop.eup %1703  ;;  %v1135_v20 = vadd.f32 %v2174_v12, %v942_v22  ;;  %1285 = vst [vmem:[%s2266_s15 + $0x1a8] sm:$0xff] %v1133_v37  ;;  %v438_v8 = vsub.f32 %v2603_v25, %v2110_v40 }
 0x103   : > { %1723 = vtanh.f32 %v608_v16  ;;  %v439_v24 = vsub.f32 %v2603_v25, %v2112_v41  ;;  %v1706_v39 = vpop.eup %1705  ;;  %1286 = vst [vmem:[%s2266_s15 + $0x1b0] sm:$0xff] %v1134_v35  ;;  %v959_v7 = vmul.f32 %v1704_v32, %v2140_v56  ;;  %v440_v11 = vsub.f32 %v2603_v25, %v2114_v42  ;;  %v2653_v35 = vpop.permute.xlu0 %265 }
 0x104   : > { %1725 = vtanh.f32 %v609_v36  ;;  %v441_v9 = vsub.f32 %v2603_v25, %v2116_v43  ;;  %v1708_v28 = vpop.eup %1707  ;;  %1287 = vst [vmem:[%s2266_s15 + $0x1b8] sm:$0xff] %v1135_v20  ;;  %v960_v23 = vmul.f32 %v1706_v39, %v2142_v57  ;;  %v442_v27 = vsub.f32 %v2603_v25, %v2118_v44 }
 0x105   : > { %1727 = vtanh.f32 %v610_v47  ;;  %v443_v30 = vsub.f32 %v2603_v25, %v2120_v45  ;;  %v1710_v19 = vpop.eup %1709  ;;  %v961_v34 = vmul.f32 %v1708_v28, %v2144_v58  ;;  %v1152_v31 = vadd.f32 %v2156_v0, %v959_v7 }
 0x106   : > { %1729 = vtanh.f32 %v611_v17  ;;  %v444_v13 = vsub.f32 %v2603_v25, %v2122_v46  ;;  %v1712_v33 = vpop.eup %1711  ;;  %v962_v14 = vmul.f32 %v1710_v19, %v2146_v59  ;;  %v1153_v16 = vadd.f32 %v2158_v1, %v960_v23 }
 0x107   : > { %1731 = vtanh.f32 %v612_v26  ;;  %v630_v36 = vmul.f32 %v2124_v48, %v437_v15  ;;  %v1714_v21 = vpop.eup %1713  ;;  %v963_v18 = vmul.f32 %v1712_v33, %v2148_v60  ;;  %v1154_v10 = vadd.f32 %v2160_v2, %v961_v34  ;;  %1304 = vst [vmem:[%s2266_s15 + $0x240] sm:$0xff] %v1152_v31 }
 0x108   : > { %1733 = vtanh.f32 %v613_v29  ;;  %v631_v47 = vmul.f32 %v2126_v49, %v438_v8  ;;  %v964_v17 = vmul.f32 %v1714_v21, %v2150_v61  ;;  %v1155_v22 = vadd.f32 %v2162_v3, %v962_v14  ;;  %1305 = vst [vmem:[%s2266_s15 + $0x248] sm:$0xff] %v1153_v16 }
 0x109   : > { %v1716_v25 = vpop.eup %1715  ;;  %v632_v37 = vmul.f32 %v2128_v50, %v439_v24  ;;  %v633_v26 = vmul.f32 %v2130_v51, %v440_v11  ;;  %v1156_v29 = vadd.f32 %v2164_v4, %v963_v18  ;;  %1306 = vst [vmem:[%s2266_s15 + $0x250] sm:$0xff] %v1154_v10  ;;  %v634_v20 = vmul.f32 %v2132_v52, %v441_v9 }
 0x10a   : > { %v1718_v15 = vpop.eup %1717  ;;  %v965_v32 = vmul.f32 %v1716_v25, %v2152_v62  ;;  %v635_v8 = vmul.f32 %v2134_v53, %v442_v27  ;;  %v1157_v24 = vadd.f32 %v2166_v5, %v964_v17  ;;  %1307 = vst [vmem:[%s2266_s15 + $0x258] sm:$0xff] %v1155_v22  ;;  %v636_v7 = vmul.f32 %v2136_v54, %v443_v30 }
 0x10b   : > { %v966_v39 = vmul.f32 %v1718_v15, %v2154_v63  ;;  %1735 = vtanh.f32 %v630_v36  ;;  %1308 = vst [vmem:[%s2266_s15 + $0x260] sm:$0xff] %v1156_v29  ;;  %v429_v28 = vsub.f32 %v2653_v35, %v2108_v38  ;;  %v430_v9 = vsub.f32 %v2653_v35, %v2110_v40 }
 0x10c   : > { %v1158_v11 = vadd.f32 %v2168_v6, %v965_v32  ;;  %1737 = vtanh.f32 %v631_v47  ;;  %1309 = vst [vmem:[%s2266_s15 + $0x268] sm:$0xff] %v1157_v24  ;;  %v637_v27 = vmul.f32 %v2138_v55, %v444_v13  ;;  %v431_v30 = vsub.f32 %v2653_v35, %v2112_v41 }
 0x10d   : > { %v1159_v23 = vadd.f32 %v2174_v12, %v966_v39  ;;  %1739 = vtanh.f32 %v632_v37  ;;  %v432_v34 = vsub.f32 %v2653_v35, %v2114_v42  ;;  %v433_v31 = vsub.f32 %v2653_v35, %v2116_v43 }
 0x10e   : > { %v1720_v19 = vpop.eup %1719  ;;  %1310 = vst [vmem:[%s2266_s15 + $0x270] sm:$0xff] %v1158_v11  ;;  %1741 = vtanh.f32 %v633_v26  ;;  %v434_v33 = vsub.f32 %v2653_v35, %v2118_v44  ;;  %v435_v16 = vsub.f32 %v2653_v35, %v2120_v45  ;;  %v436_v36 = vsub.f32 %v2653_v35, %v2122_v46 }
 0x10f   : > { %v1722_v14 = vpop.eup %1721  ;;  %1311 = vst [vmem:[%s2266_s15 + $0x278] sm:$0xff] %v1159_v23  ;;  %v951_v13 = vmul.f32 %v1720_v19, %v2140_v56  ;;  %1743 = vtanh.f32 %v634_v20  ;;  %v622_v10 = vmul.f32 %v2124_v48, %v429_v28  ;;  %v623_v47 = vmul.f32 %v2126_v49, %v430_v9 }
 0x110   : > { %v1724_v21 = vpop.eup %1723  ;;  %v952_v18 = vmul.f32 %v1722_v14, %v2142_v57  ;;  %1745 = vtanh.f32 %v635_v8  ;;  %v624_v37 = vmul.f32 %v2128_v50, %v431_v30  ;;  %v625_v32 = vmul.f32 %v2130_v51, %v432_v34 }
 0x111   : > { %v1726_v25 = vpop.eup %1725  ;;  %v953_v17 = vmul.f32 %v1724_v21, %v2144_v58  ;;  %v1144_v22 = vadd.f32 %v2156_v0, %v951_v13  ;;  %1747 = vtanh.f32 %v636_v7  ;;  %v626_v39 = vmul.f32 %v2132_v52, %v433_v31  ;;  %v2702_v7 = vpop.permute.xlu1 %280 }
 0x112   : > { %v1728_v26 = vpop.eup %1727  ;;  %v954_v35 = vmul.f32 %v1726_v25, %v2146_v59  ;;  %v1145_v15 = vadd.f32 %v2158_v1, %v952_v18  ;;  %1749 = vtanh.f32 %v637_v27  ;;  %v627_v24 = vmul.f32 %v2134_v53, %v434_v33 }
 0x113   : > { %v1730_v29 = vpop.eup %1729  ;;  %v955_v20 = vmul.f32 %v1728_v26, %v2148_v60  ;;  %v1146_v8 = vadd.f32 %v2160_v2, %v953_v17  ;;  %1296 = vst [vmem:[%s2266_s15 + $0x200] sm:$0xff] %v1144_v22  ;;  %v628_v23 = vmul.f32 %v2136_v54, %v435_v16  ;;  %1751 = vtanh.f32 %v622_v10 }
 0x114   : > { %v1732_v11 = vpop.eup %1731  ;;  %v956_v28 = vmul.f32 %v1730_v29, %v2150_v61  ;;  %v1147_v9 = vadd.f32 %v2162_v3, %v954_v35  ;;  %1297 = vst [vmem:[%s2266_s15 + $0x208] sm:$0xff] %v1145_v15  ;;  %v629_v34 = vmul.f32 %v2138_v55, %v436_v36  ;;  %1753 = vtanh.f32 %v623_v47 }
 0x115   : > { %v1734_v27 = vpop.eup %1733  ;;  %v957_v30 = vmul.f32 %v1732_v11, %v2152_v62  ;;  %v1148_v19 = vadd.f32 %v2164_v4, %v955_v20  ;;  %1298 = vst [vmem:[%s2266_s15 + $0x210] sm:$0xff] %v1146_v8  ;;  %1755 = vtanh.f32 %v624_v37  ;;  %v453_v14 = vsub.f32 %v2702_v7, %v2108_v38 }
 0x116   : > { %v958_v31 = vmul.f32 %v1734_v27, %v2154_v63  ;;  %v1149_v33 = vadd.f32 %v2166_v5, %v956_v28  ;;  %1299 = vst [vmem:[%s2266_s15 + $0x218] sm:$0xff] %v1147_v9  ;;  %1757 = vtanh.f32 %v625_v32  ;;  %v454_v16 = vsub.f32 %v2702_v7, %v2110_v40 }
 0x117   : > { %v1150_v13 = vadd.f32 %v2168_v6, %v957_v30  ;;  %1300 = vst [vmem:[%s2266_s15 + $0x220] sm:$0xff] %v1148_v19  ;;  %v455_v36 = vsub.f32 %v2702_v7, %v2112_v41  ;;  %1759 = vtanh.f32 %v626_v39  ;;  %v456_v10 = vsub.f32 %v2702_v7, %v2114_v42 }
 0x118   : > { %v1736_v21 = vpop.eup %1735  ;;  %v1151_v18 = vadd.f32 %v2174_v12, %v958_v31  ;;  %1301 = vst [vmem:[%s2266_s15 + $0x228] sm:$0xff] %v1149_v33  ;;  %v457_v47 = vsub.f32 %v2702_v7, %v2116_v43  ;;  %1761 = vtanh.f32 %v627_v24  ;;  %v458_v22 = vsub.f32 %v2702_v7, %v2118_v44  ;;  %v2752_v31 = vpop.permute.xlu0 %275 }
 0x119   : > { %v1738_v25 = vpop.eup %1737  ;;  %1302 = vst [vmem:[%s2266_s15 + $0x230] sm:$0xff] %v1150_v13  ;;  %v975_v17 = vmul.f32 %v1736_v21, %v2140_v56  ;;  %v459_v37 = vsub.f32 %v2702_v7, %v2120_v45  ;;  %1763 = vtanh.f32 %v628_v23  ;;  %v460_v15 = vsub.f32 %v2702_v7, %v2122_v46 }
 0x11a   : > { %v1740_v26 = vpop.eup %1739  ;;  %1303 = vst [vmem:[%s2266_s15 + $0x238] sm:$0xff] %v1151_v18  ;;  %v976_v35 = vmul.f32 %v1738_v25, %v2142_v57  ;;  %v646_v32 = vmul.f32 %v2124_v48, %v453_v14  ;;  %1765 = vtanh.f32 %v629_v34  ;;  %v647_v39 = vmul.f32 %v2126_v49, %v454_v16 }
 0x11b   : > { %v1742_v29 = vpop.eup %1741  ;;  %v977_v20 = vmul.f32 %v1740_v26, %v2144_v58  ;;  %v1168_v8 = vadd.f32 %v2156_v0, %v975_v17  ;;  %v648_v9 = vmul.f32 %v2128_v50, %v455_v36  ;;  %v649_v7 = vmul.f32 %v2130_v51, %v456_v10 }
 0x11c   : > { %v1744_v24 = vpop.eup %1743  ;;  %v978_v11 = vmul.f32 %v1742_v29, %v2146_v59  ;;  %v1169_v28 = vadd.f32 %v2158_v1, %v976_v35  ;;  %v650_v19 = vmul.f32 %v2132_v52, %v457_v47  ;;  %v651_v34 = vmul.f32 %v2134_v53, %v458_v22 }
 0x11d   : > { %v1746_v23 = vpop.eup %1745  ;;  %v979_v27 = vmul.f32 %v1744_v24, %v2148_v60  ;;  %v1170_v30 = vadd.f32 %v2160_v2, %v977_v20  ;;  %1320 = vst [vmem:[%s2266_s15 + $0x2c0] sm:$0xff] %v1168_v8  ;;  %v652_v16 = vmul.f32 %v2136_v54, %v459_v37  ;;  %1767 = vtanh.f32 %v646_v32 }
 0x11e   : > { %v1748_v33 = vpop.eup %1747  ;;  %v980_v14 = vmul.f32 %v1746_v23, %v2150_v61  ;;  %v1171_v13 = vadd.f32 %v2162_v3, %v978_v11  ;;  %1321 = vst [vmem:[%s2266_s15 + $0x2c8] sm:$0xff] %v1169_v28  ;;  %v653_v10 = vmul.f32 %v2138_v55, %v460_v15  ;;  %1769 = vtanh.f32 %v647_v39 }
 0x11f   : > { %v1750_v36 = vpop.eup %1749  ;;  %v981_v21 = vmul.f32 %v1748_v33, %v2152_v62  ;;  %v1172_v18 = vadd.f32 %v2164_v4, %v979_v27  ;;  %1322 = vst [vmem:[%s2266_s15 + $0x2d0] sm:$0xff] %v1170_v30  ;;  %1771 = vtanh.f32 %v648_v9  ;;  %v445_v17 = vsub.f32 %v2752_v31, %v2108_v38 }
 0x120   : > { %v982_v47 = vmul.f32 %v1750_v36, %v2154_v63  ;;  %v1173_v25 = vadd.f32 %v2166_v5, %v980_v14  ;;  %1323 = vst [vmem:[%s2266_s15 + $0x2d8] sm:$0xff] %v1171_v13  ;;  %v1752_v22 = vpop.eup %1751  ;;  %1773 = vtanh.f32 %v649_v7  ;;  %v446_v26 = vsub.f32 %v2752_v31, %v2110_v40 }
 0x121   : > { %v1174_v37 = vadd.f32 %v2168_v6, %v981_v21  ;;  %1324 = vst [vmem:[%s2266_s15 + $0x2e0] sm:$0xff] %v1172_v18  ;;  %v447_v35 = vsub.f32 %v2752_v31, %v2112_v41  ;;  %v1754_v15 = vpop.eup %1753  ;;  %v967_v29 = vmul.f32 %v1752_v22, %v2140_v56  ;;  %1775 = vtanh.f32 %v650_v19 }
 0x122   : > { %v1175_v32 = vadd.f32 %v2174_v12, %v982_v47  ;;  %1325 = vst [vmem:[%s2266_s15 + $0x2e8] sm:$0xff] %v1173_v25  ;;  %v448_v20 = vsub.f32 %v2752_v31, %v2114_v42  ;;  %v1756_v8 = vpop.eup %1755  ;;  %v968_v39 = vmul.f32 %v1754_v15, %v2142_v57  ;;  %1777 = vtanh.f32 %v651_v34 }
 0x123   : > { %1326 = vst [vmem:[%s2266_s15 + $0x2f0] sm:$0xff] %v1174_v37  ;;  %v449_v24 = vsub.f32 %v2752_v31, %v2116_v43  ;;  %v450_v11 = vsub.f32 %v2752_v31, %v2118_v44  ;;  %v1758_v28 = vpop.eup %1757  ;;  %v969_v9 = vmul.f32 %v1756_v8, %v2144_v58  ;;  %v1160_v7 = vadd.f32 %v2156_v0, %v967_v29 }
 0x124   : > { %1327 = vst [vmem:[%s2266_s15 + $0x2f8] sm:$0xff] %v1175_v32  ;;  %1779 = vtanh.f32 %v652_v16  ;;  %v451_v23 = vsub.f32 %v2752_v31, %v2120_v45  ;;  %v1760_v27 = vpop.eup %1759  ;;  %v970_v30 = vmul.f32 %v1758_v28, %v2146_v59  ;;  %v1161_v19 = vadd.f32 %v2158_v1, %v968_v39 }
 0x125   : > { %1781 = vtanh.f32 %v653_v10  ;;  %v638_v34 = vmul.f32 %v2124_v48, %v445_v17  ;;  %v1762_v33 = vpop.eup %1761  ;;  %v971_v14 = vmul.f32 %v1760_v27, %v2148_v60  ;;  %v1162_v13 = vadd.f32 %v2160_v2, %v969_v9  ;;  %1312 = vst [vmem:[%s2266_s15 + $0x280] sm:$0xff] %v1160_v7 }
 0x126   : > { %v452_v16 = vsub.f32 %v2752_v31, %v2122_v46  ;;  %v639_v36 = vmul.f32 %v2126_v49, %v446_v26  ;;  %v1764_v21 = vpop.eup %1763  ;;  %v972_v18 = vmul.f32 %v1762_v33, %v2150_v61  ;;  %v1163_v10 = vadd.f32 %v2162_v3, %v970_v30  ;;  %1313 = vst [vmem:[%s2266_s15 + $0x288] sm:$0xff] %v1161_v19  ;;  %v2807_v26 = vpop.permute.xlu1 %290 }
 0x127   : > { %v640_v47 = vmul.f32 %v2128_v50, %v447_v35  ;;  %v1766_v25 = vpop.eup %1765  ;;  %v973_v17 = vmul.f32 %v1764_v21, %v2152_v62  ;;  %v1164_v22 = vadd.f32 %v2164_v4, %v971_v14  ;;  %1314 = vst [vmem:[%s2266_s15 + $0x290] sm:$0xff] %v1162_v13  ;;  %v641_v31 = vmul.f32 %v2130_v51, %v448_v20 }
 0x128   : > { %v642_v37 = vmul.f32 %v2132_v52, %v449_v24  ;;  %v974_v15 = vmul.f32 %v1766_v25, %v2154_v63  ;;  %v1165_v32 = vadd.f32 %v2166_v5, %v972_v18  ;;  %1315 = vst [vmem:[%s2266_s15 + $0x298] sm:$0xff] %v1163_v10  ;;  %v643_v35 = vmul.f32 %v2134_v53, %v450_v11 }
 0x129   : > { %1783 = vtanh.f32 %v638_v34  ;;  %v1166_v29 = vadd.f32 %v2168_v6, %v973_v17  ;;  %1316 = vst [vmem:[%s2266_s15 + $0x2a0] sm:$0xff] %v1164_v22  ;;  %v644_v8 = vmul.f32 %v2136_v54, %v451_v23  ;;  %v645_v20 = vmul.f32 %v2138_v55, %v452_v16 }
 0x12a   : > { %1785 = vtanh.f32 %v639_v36  ;;  %v1768_v39 = vpop.eup %1767  ;;  %v1167_v24 = vadd.f32 %v2174_v12, %v974_v15  ;;  %1317 = vst [vmem:[%s2266_s15 + $0x2a8] sm:$0xff] %v1165_v32  ;;  %v469_v28 = vsub.f32 %v2807_v26, %v2108_v38  ;;  %v470_v11 = vsub.f32 %v2807_v26, %v2110_v40 }
 0x12b   : > { %1787 = vtanh.f32 %v640_v47  ;;  %v1770_v9 = vpop.eup %1769  ;;  %1318 = vst [vmem:[%s2266_s15 + $0x2b0] sm:$0xff] %v1166_v29  ;;  %v991_v7 = vmul.f32 %v1768_v39, %v2140_v56  ;;  %v471_v23 = vsub.f32 %v2807_v26, %v2112_v41  ;;  %v472_v27 = vsub.f32 %v2807_v26, %v2114_v42 }
 0x12c   : > { %1789 = vtanh.f32 %v641_v31  ;;  %v1772_v30 = vpop.eup %1771  ;;  %1319 = vst [vmem:[%s2266_s15 + $0x2b8] sm:$0xff] %v1167_v24  ;;  %v992_v19 = vmul.f32 %v1770_v9, %v2142_v57  ;;  %v473_v34 = vsub.f32 %v2807_v26, %v2116_v43  ;;  %v474_v33 = vsub.f32 %v2807_v26, %v2118_v44 }
 0x12d   : > { %1791 = vtanh.f32 %v642_v37  ;;  %v1774_v14 = vpop.eup %1773  ;;  %v993_v13 = vmul.f32 %v1772_v30, %v2144_v58  ;;  %v1184_v16 = vadd.f32 %v2156_v0, %v991_v7  ;;  %v475_v36 = vsub.f32 %v2807_v26, %v2120_v45 }
 0x12e   : > { %1793 = vtanh.f32 %v643_v35  ;;  %v1776_v21 = vpop.eup %1775  ;;  %v994_v18 = vmul.f32 %v1774_v14, %v2146_v59  ;;  %v1185_v10 = vadd.f32 %v2158_v1, %v992_v19  ;;  %v662_v47 = vmul.f32 %v2124_v48, %v469_v28 }
 0x12f   : > { %1795 = vtanh.f32 %v644_v8  ;;  %v1778_v25 = vpop.eup %1777  ;;  %v995_v17 = vmul.f32 %v1776_v21, %v2148_v60  ;;  %v1186_v22 = vadd.f32 %v2160_v2, %v993_v13  ;;  %1336 = vst [vmem:[%s2266_s15 + $0x340] sm:$0xff] %v1184_v16  ;;  %v663_v31 = vmul.f32 %v2126_v49, %v470_v11  ;;  %v2852_v8 = vpop.permute.xlu0 %285 }
 0x130   : > { %1797 = vtanh.f32 %v645_v20  ;;  %v996_v15 = vmul.f32 %v1778_v25, %v2150_v61  ;;  %v1187_v32 = vadd.f32 %v2162_v3, %v994_v18  ;;  %1337 = vst [vmem:[%s2266_s15 + $0x348] sm:$0xff] %v1185_v10  ;;  %v476_v35 = vsub.f32 %v2807_v26, %v2122_v46 }
 0x131   : > { %v1780_v37 = vpop.eup %1779  ;;  %v664_v29 = vmul.f32 %v2128_v50, %v471_v23  ;;  %v1188_v24 = vadd.f32 %v2164_v4, %v995_v17  ;;  %1338 = vst [vmem:[%s2266_s15 + $0x350] sm:$0xff] %v1186_v22  ;;  %v665_v28 = vmul.f32 %v2130_v51, %v472_v27  ;;  %v666_v11 = vmul.f32 %v2132_v52, %v473_v34 }
 0x132   : > { %v1782_v39 = vpop.eup %1781  ;;  %v997_v20 = vmul.f32 %v1780_v37, %v2152_v62  ;;  %v1189_v26 = vadd.f32 %v2166_v5, %v996_v15  ;;  %1339 = vst [vmem:[%s2266_s15 + $0x358] sm:$0xff] %v1187_v32  ;;  %v667_v7 = vmul.f32 %v2134_v53, %v474_v33  ;;  %1799 = vtanh.f32 %v662_v47 }
 0x133   : > { %v998_v9 = vmul.f32 %v1782_v39, %v2154_v63  ;;  %1340 = vst [vmem:[%s2266_s15 + $0x360] sm:$0xff] %v1188_v24  ;;  %v668_v30 = vmul.f32 %v2136_v54, %v475_v36  ;;  %1801 = vtanh.f32 %v663_v31  ;;  %v461_v27 = vsub.f32 %v2852_v8, %v2108_v38 }
 0x134   : > { %v1190_v23 = vadd.f32 %v2168_v6, %v997_v20  ;;  %1341 = vst [vmem:[%s2266_s15 + $0x368] sm:$0xff] %v1189_v26  ;;  %v669_v34 = vmul.f32 %v2138_v55, %v476_v35  ;;  %1803 = vtanh.f32 %v664_v29  ;;  %v462_v33 = vsub.f32 %v2852_v8, %v2110_v40 }
 0x135   : > { %v1191_v19 = vadd.f32 %v2174_v12, %v998_v9  ;;  %1805 = vtanh.f32 %v665_v28  ;;  %v463_v13 = vsub.f32 %v2852_v8, %v2112_v41  ;;  %v464_v16 = vsub.f32 %v2852_v8, %v2114_v42 }
 0x136   : > { %v1784_v14 = vpop.eup %1783  ;;  %1342 = vst [vmem:[%s2266_s15 + $0x370] sm:$0xff] %v1190_v23  ;;  %v465_v36 = vsub.f32 %v2852_v8, %v2116_v43  ;;  %1807 = vtanh.f32 %v666_v11  ;;  %v466_v10 = vsub.f32 %v2852_v8, %v2118_v44  ;;  %v467_v47 = vsub.f32 %v2852_v8, %v2120_v45 }
 0x137   : > { %v1786_v21 = vpop.eup %1785  ;;  %1343 = vst [vmem:[%s2266_s15 + $0x378] sm:$0xff] %v1191_v19  ;;  %v983_v18 = vmul.f32 %v1784_v14, %v2140_v56  ;;  %1809 = vtanh.f32 %v667_v7  ;;  %v468_v22 = vsub.f32 %v2852_v8, %v2122_v46  ;;  %v654_v31 = vmul.f32 %v2124_v48, %v461_v27  ;;  %v2901_v7 = vpop.permute.xlu1 %300 }
 0x138   : > { %v1788_v25 = vpop.eup %1787  ;;  %v984_v17 = vmul.f32 %v1786_v21, %v2142_v57  ;;  %1811 = vtanh.f32 %v668_v30  ;;  %v655_v35 = vmul.f32 %v2126_v49, %v462_v33  ;;  %v656_v24 = vmul.f32 %v2128_v50, %v463_v13 }
 0x139   : > { %v1790_v37 = vpop.eup %1789  ;;  %v985_v15 = vmul.f32 %v1788_v25, %v2144_v58  ;;  %v1176_v32 = vadd.f32 %v2156_v0, %v983_v18  ;;  %1813 = vtanh.f32 %v669_v34  ;;  %v657_v9 = vmul.f32 %v2130_v51, %v464_v16 }
 0x13a   : > { %v1792_v29 = vpop.eup %1791  ;;  %v986_v39 = vmul.f32 %v1790_v37, %v2146_v59  ;;  %v1177_v20 = vadd.f32 %v2158_v1, %v984_v17  ;;  %v658_v26 = vmul.f32 %v2132_v52, %v465_v36  ;;  %v659_v19 = vmul.f32 %v2134_v53, %v466_v10 }
 0x13b   : > { %v1794_v8 = vpop.eup %1793  ;;  %v987_v28 = vmul.f32 %v1792_v29, %v2148_v60  ;;  %v1178_v11 = vadd.f32 %v2160_v2, %v985_v15  ;;  %1328 = vst [vmem:[%s2266_s15 + $0x300] sm:$0xff] %v1176_v32  ;;  %1815 = vtanh.f32 %v654_v31  ;;  %v660_v13 = vmul.f32 %v2136_v54, %v467_v47 }
 0x13c   : > { %v1796_v23 = vpop.eup %1795  ;;  %v988_v30 = vmul.f32 %v1794_v8, %v2150_v61  ;;  %v1179_v27 = vadd.f32 %v2162_v3, %v986_v39  ;;  %1329 = vst [vmem:[%s2266_s15 + $0x308] sm:$0xff] %v1177_v20  ;;  %1817 = vtanh.f32 %v655_v35  ;;  %v485_v21 = vsub.f32 %v2901_v7, %v2108_v38 }
 0x13d   : > { %v1798_v34 = vpop.eup %1797  ;;  %v989_v33 = vmul.f32 %v1796_v23, %v2152_v62  ;;  %v1180_v14 = vadd.f32 %v2164_v4, %v987_v28  ;;  %1330 = vst [vmem:[%s2266_s15 + $0x310] sm:$0xff] %v1178_v11  ;;  %1819 = vtanh.f32 %v656_v24  ;;  %v661_v10 = vmul.f32 %v2138_v55, %v468_v22 }
 0x13e   : > { %v990_v16 = vmul.f32 %v1798_v34, %v2154_v63  ;;  %v1181_v36 = vadd.f32 %v2166_v5, %v988_v30  ;;  %1331 = vst [vmem:[%s2266_s15 + $0x318] sm:$0xff] %v1179_v27  ;;  %1821 = vtanh.f32 %v657_v9  ;;  %v486_v47 = vsub.f32 %v2901_v7, %v2110_v40 }
 0x13f   : > { %v1182_v18 = vadd.f32 %v2168_v6, %v989_v33  ;;  %1332 = vst [vmem:[%s2266_s15 + $0x320] sm:$0xff] %v1180_v14  ;;  %v1800_v25 = vpop.eup %1799  ;;  %1823 = vtanh.f32 %v658_v26  ;;  %v487_v31 = vsub.f32 %v2901_v7, %v2112_v41  ;;  %v488_v37 = vsub.f32 %v2901_v7, %v2114_v42 }
 0x140   : > { %v1183_v17 = vadd.f32 %v2174_v12, %v990_v16  ;;  %1333 = vst [vmem:[%s2266_s15 + $0x328] sm:$0xff] %v1181_v36  ;;  %v1802_v15 = vpop.eup %1801  ;;  %v1007_v22 = vmul.f32 %v1800_v25, %v2140_v56  ;;  %1825 = vtanh.f32 %v659_v19  ;;  %v489_v32 = vsub.f32 %v2901_v7, %v2116_v43 }
 0x141   : > { %1334 = vst [vmem:[%s2266_s15 + $0x330] sm:$0xff] %v1182_v18  ;;  %v490_v35 = vsub.f32 %v2901_v7, %v2118_v44  ;;  %v1804_v29 = vpop.eup %1803  ;;  %v1008_v39 = vmul.f32 %v1802_v15, %v2142_v57  ;;  %1827 = vtanh.f32 %v660_v13  ;;  %v491_v20 = vsub.f32 %v2901_v7, %v2120_v45 }
 0x142   : > { %1335 = vst [vmem:[%s2266_s15 + $0x338] sm:$0xff] %v1183_v17  ;;  %v678_v24 = vmul.f32 %v2124_v48, %v485_v21  ;;  %v1806_v8 = vpop.eup %1805  ;;  %v1009_v28 = vmul.f32 %v1804_v29, %v2144_v58  ;;  %v1200_v11 = vadd.f32 %v2156_v0, %v1007_v22  ;;  %1829 = vtanh.f32 %v661_v10  ;;  %v2955_v10 = vpop.permute.xlu0 %295 }
 0x143   : > { %v679_v9 = vmul.f32 %v2126_v49, %v486_v47  ;;  %v1808_v26 = vpop.eup %1807  ;;  %v1010_v23 = vmul.f32 %v1806_v8, %v2146_v59  ;;  %v1201_v30 = vadd.f32 %v2158_v1, %v1008_v39  ;;  %v492_v27 = vsub.f32 %v2901_v7, %v2122_v46 }
 0x144   : > { %v680_v19 = vmul.f32 %v2128_v50, %v487_v31  ;;  %v1810_v34 = vpop.eup %1809  ;;  %v1011_v33 = vmul.f32 %v1808_v26, %v2148_v60  ;;  %v1202_v14 = vadd.f32 %v2160_v2, %v1009_v28  ;;  %1352 = vst [vmem:[%s2266_s15 + $0x3c0] sm:$0xff] %v1200_v11  ;;  %v681_v13 = vmul.f32 %v2130_v51, %v488_v37 }
 0x145   : > { %v682_v16 = vmul.f32 %v2132_v52, %v489_v32  ;;  %v1812_v36 = vpop.eup %1811  ;;  %v1012_v21 = vmul.f32 %v1810_v34, %v2150_v61  ;;  %v1203_v18 = vadd.f32 %v2162_v3, %v1010_v23  ;;  %1353 = vst [vmem:[%s2266_s15 + $0x3c8] sm:$0xff] %v1201_v30  ;;  %v683_v7 = vmul.f32 %v2134_v53, %v490_v35 }
 0x146   : > { %1831 = vtanh.f32 %v678_v24  ;;  %v1814_v47 = vpop.eup %1813  ;;  %v1013_v25 = vmul.f32 %v1812_v36, %v2152_v62  ;;  %v1204_v17 = vadd.f32 %v2164_v4, %v1011_v33  ;;  %1354 = vst [vmem:[%s2266_s15 + $0x3d0] sm:$0xff] %v1202_v14  ;;  %v684_v31 = vmul.f32 %v2136_v54, %v491_v20 }
 0x147   : > { %1833 = vtanh.f32 %v679_v9  ;;  %v1014_v37 = vmul.f32 %v1814_v47, %v2154_v63  ;;  %v1205_v15 = vadd.f32 %v2166_v5, %v1012_v21  ;;  %1355 = vst [vmem:[%s2266_s15 + $0x3d8] sm:$0xff] %v1203_v18  ;;  %v685_v22 = vmul.f32 %v2138_v55, %v492_v27 }
 0x148   : > { %1835 = vtanh.f32 %v680_v19  ;;  %v1816_v32 = vpop.eup %1815  ;;  %v1206_v35 = vadd.f32 %v2168_v6, %v1013_v25  ;;  %1356 = vst [vmem:[%s2266_s15 + $0x3e0] sm:$0xff] %v1204_v17  ;;  %v477_v29 = vsub.f32 %v2955_v10, %v2108_v38  ;;  %v478_v39 = vsub.f32 %v2955_v10, %v2110_v40 }
 0x149   : > { %1837 = vtanh.f32 %v681_v13  ;;  %v1818_v20 = vpop.eup %1817  ;;  %v1207_v24 = vadd.f32 %v2174_v12, %v1014_v37  ;;  %1357 = vst [vmem:[%s2266_s15 + $0x3e8] sm:$0xff] %v1205_v15  ;;  %v999_v8 = vmul.f32 %v1816_v32, %v2140_v56  ;;  %v479_v28 = vsub.f32 %v2955_v10, %v2112_v41 }
 0x14a   : > { %1839 = vtanh.f32 %v682_v16  ;;  %v1820_v11 = vpop.eup %1819  ;;  %1358 = vst [vmem:[%s2266_s15 + $0x3f0] sm:$0xff] %v1206_v35  ;;  %v1000_v9 = vmul.f32 %v1818_v20, %v2142_v57  ;;  %v480_v26 = vsub.f32 %v2955_v10, %v2114_v42  ;;  %v481_v23 = vsub.f32 %v2955_v10, %v2116_v43 }
 0x14b   : > { %1841 = vtanh.f32 %v683_v7  ;;  %v1822_v30 = vpop.eup %1821  ;;  %1359 = vst [vmem:[%s2266_s15 + $0x3f8] sm:$0xff] %v1207_v24  ;;  %v1001_v27 = vmul.f32 %v1820_v11, %v2144_v58  ;;  %v1192_v19 = vadd.f32 %v2156_v0, %v999_v8  ;;  %v482_v34 = vsub.f32 %v2955_v10, %v2118_v44 }
 0x14c   : > { %1843 = vtanh.f32 %v684_v31  ;;  %v1824_v33 = vpop.eup %1823  ;;  %v1002_v14 = vmul.f32 %v1822_v30, %v2146_v59  ;;  %v1193_v13 = vadd.f32 %v2158_v1, %v1000_v9  ;;  %v670_v16 = vmul.f32 %v2124_v48, %v477_v29 }
 0x14d   : > { %1845 = vtanh.f32 %v685_v22  ;;  %v1826_v36 = vpop.eup %1825  ;;  %v1003_v21 = vmul.f32 %v1824_v33, %v2148_v60  ;;  %v1194_v18 = vadd.f32 %v2160_v2, %v1001_v27  ;;  %1344 = vst [vmem:[%s2266_s15 + $0x380] sm:$0xff] %v1192_v19  ;;  %v483_v7 = vsub.f32 %v2955_v10, %v2120_v45 }
 0x14e   : > { %v671_v47 = vmul.f32 %v2126_v49, %v478_v39  ;;  %v1828_v25 = vpop.eup %1827  ;;  %v1004_v17 = vmul.f32 %v1826_v36, %v2150_v61  ;;  %v1195_v31 = vadd.f32 %v2162_v3, %v1002_v14  ;;  %1345 = vst [vmem:[%s2266_s15 + $0x388] sm:$0xff] %v1193_v13  ;;  %v484_v37 = vsub.f32 %v2955_v10, %v2122_v46  ;;  %v3006_v39 = vpop.permute.xlu0 %305 }
 0x14f   : > { %v672_v15 = vmul.f32 %v2128_v50, %v479_v28  ;;  %v1830_v22 = vpop.eup %1829  ;;  %v1005_v32 = vmul.f32 %v1828_v25, %v2152_v62  ;;  %v1196_v35 = vadd.f32 %v2164_v4, %v1003_v21  ;;  %1346 = vst [vmem:[%s2266_s15 + $0x390] sm:$0xff] %v1194_v18  ;;  %v673_v29 = vmul.f32 %v2130_v51, %v480_v26 }
 0x150   : > { %v1006_v20 = vmul.f32 %v1830_v22, %v2154_v63  ;;  %v1197_v24 = vadd.f32 %v2166_v5, %v1004_v17  ;;  %1347 = vst [vmem:[%s2266_s15 + $0x398] sm:$0xff] %v1195_v31  ;;  %v674_v10 = vmul.f32 %v2132_v52, %v481_v23  ;;  %1847 = vtanh.f32 %v670_v16 }
 0x151   : > { %v1198_v8 = vadd.f32 %v2168_v6, %v1005_v32  ;;  %1348 = vst [vmem:[%s2266_s15 + $0x3a0] sm:$0xff] %v1196_v35  ;;  %v675_v28 = vmul.f32 %v2134_v53, %v482_v34  ;;  %v676_v11 = vmul.f32 %v2136_v54, %v483_v7  ;;  %1849 = vtanh.f32 %v671_v47 }
 0x152   : > { %v1199_v26 = vadd.f32 %v2174_v12, %v1006_v20  ;;  %1349 = vst [vmem:[%s2266_s15 + $0x3a8] sm:$0xff] %v1197_v24  ;;  %v677_v30 = vmul.f32 %v2138_v55, %v484_v37  ;;  %1851 = vtanh.f32 %v672_v15  ;;  %v493_v23 = vsub.f32 %v3006_v39, %v2108_v38 }
 0x153   : > { %v1832_v9 = vpop.eup %1831  ;;  %1350 = vst [vmem:[%s2266_s15 + $0x3b0] sm:$0xff] %v1198_v8  ;;  %1853 = vtanh.f32 %v673_v29  ;;  %v494_v34 = vsub.f32 %v3006_v39, %v2110_v40  ;;  %v495_v33 = vsub.f32 %v3006_v39, %v2112_v41  ;;  %v496_v38 = vsub.f32 %v3006_v39, %v2114_v42 }
 0x154   : > { %v1834_v27 = vpop.eup %1833  ;;  %v1023_v19 = vmul.f32 %v1832_v9, %v2140_v56  ;;  %1351 = vst [vmem:[%s2266_s15 + $0x3b8] sm:$0xff] %v1199_v26  ;;  %1855 = vtanh.f32 %v674_v10  ;;  %v497_v16 = vsub.f32 %v3006_v39, %v2116_v43  ;;  %v498_v41 = vsub.f32 %v3006_v39, %v2118_v44 }
 0x155   : > { %v1836_v14 = vpop.eup %1835  ;;  %v1024_v13 = vmul.f32 %v1834_v27, %v2142_v57  ;;  %1857 = vtanh.f32 %v675_v28  ;;  %v686_v42 = vmul.f32 %v2124_v48, %v493_v23  ;;  %v687_v31 = vmul.f32 %v2126_v49, %v494_v34 }
 0x156   : > { %v1838_v36 = vpop.eup %1837  ;;  %v1025_v21 = vmul.f32 %v1836_v14, %v2144_v58  ;;  %v1216_v40 = vadd.f32 %v2156_v0, %v1023_v19  ;;  %1859 = vtanh.f32 %v676_v11  ;;  %v499_v48 = vsub.f32 %v3006_v39, %v2120_v45 }
 0x157   : > { %v1840_v18 = vpop.eup %1839  ;;  %v1026_v7 = vmul.f32 %v1838_v36, %v2146_v59  ;;  %v1217_v47 = vadd.f32 %v2158_v1, %v1024_v13  ;;  %1861 = vtanh.f32 %v677_v30  ;;  %v688_v22 = vmul.f32 %v2128_v50, %v495_v33 }
 0x158   : > { %v1842_v43 = vpop.eup %1841  ;;  %v1027_v25 = vmul.f32 %v1840_v18, %v2148_v60  ;;  %v1218_v17 = vadd.f32 %v2160_v2, %v1025_v21  ;;  %1368 = vst [vmem:[%s2266_s15 + $0x440] sm:$0xff] %v1216_v40  ;;  %v500_v49 = vsub.f32 %v3006_v39, %v2122_v46  ;;  %v689_v20 = vmul.f32 %v2130_v51, %v496_v38 }
 0x159   : > { %v1844_v44 = vpop.eup %1843  ;;  %v1028_v37 = vmul.f32 %v1842_v43, %v2150_v61  ;;  %v1219_v15 = vadd.f32 %v2162_v3, %v1026_v7  ;;  %1369 = vst [vmem:[%s2266_s15 + $0x448] sm:$0xff] %v1217_v47  ;;  %v690_v45 = vmul.f32 %v2132_v52, %v497_v16  ;;  %1863 = vtanh.f32 %v686_v42 }
 0x15a   : > { %v1846_v32 = vpop.eup %1845  ;;  %v1029_v35 = vmul.f32 %v1844_v44, %v2152_v62  ;;  %v1220_v29 = vadd.f32 %v2164_v4, %v1027_v25  ;;  %1370 = vst [vmem:[%s2266_s15 + $0x450] sm:$0xff] %v1218_v17  ;;  %v691_v8 = vmul.f32 %v2134_v53, %v498_v41  ;;  %1865 = vtanh.f32 %v687_v31 }
 0x15b   : > { %v1030_v24 = vmul.f32 %v1846_v32, %v2154_v63  ;;  %v1221_v10 = vadd.f32 %v2166_v5, %v1028_v37  ;;  %1371 = vst [vmem:[%s2266_s15 + $0x458] sm:$0xff] %v1219_v15  ;;  %v692_v51 = vmul.f32 %v2136_v54, %v499_v48  ;;  %1867 = vtanh.f32 %v688_v22 }
 0x15c   : > { %v1222_v50 = vadd.f32 %v2168_v6, %v1029_v35  ;;  %1372 = vst [vmem:[%s2266_s15 + $0x460] sm:$0xff] %v1220_v29  ;;  %v693_v28 = vmul.f32 %v2138_v55, %v500_v49  ;;  %1869 = vtanh.f32 %v689_v20 }
 0x15d   : > { %v1223_v46 = vadd.f32 %v2174_v12, %v1030_v24  ;;  %1373 = vst [vmem:[%s2266_s15 + $0x468] sm:$0xff] %v1221_v10  ;;  %v1848_v39 = vpop.eup %1847  ;;  %1871 = vtanh.f32 %v690_v45 }
 0x15e   : > { %1374 = vst [vmem:[%s2266_s15 + $0x470] sm:$0xff] %v1222_v50  ;;  %v1850_v11 = vpop.eup %1849  ;;  %v1015_v52 = vmul.f32 %v1848_v39, %v2140_v56  ;;  %1873 = vtanh.f32 %v691_v8 }
 0x15f   : > { %1375 = vst [vmem:[%s2266_s15 + $0x478] sm:$0xff] %v1223_v46  ;;  %v1852_v9 = vpop.eup %1851  ;;  %v1016_v53 = vmul.f32 %v1850_v11, %v2142_v57  ;;  %1875 = vtanh.f32 %v692_v51 }
 0x160   : > { %v1854_v26 = vpop.eup %1853  ;;  %v1017_v54 = vmul.f32 %v1852_v9, %v2144_v58  ;;  %v1208_v30 = vadd.f32 %v2156_v0, %v1015_v52  ;;  %1877 = vtanh.f32 %v693_v28 }
 0x161   : > { %v1856_v55 = vpop.eup %1855  ;;  %v1018_v23 = vmul.f32 %v1854_v26, %v2146_v59  ;;  %v1209_v27 = vadd.f32 %v2158_v1, %v1016_v53 }
 0x162   : > { %v1858_v19 = vpop.eup %1857  ;;  %v1019_v34 = vmul.f32 %v1856_v55, %v2148_v60  ;;  %v1210_v33 = vadd.f32 %v2160_v2, %v1017_v54  ;;  %1360 = vst [vmem:[%s2266_s15 + $0x400] sm:$0xff] %v1208_v30 }
 0x163   : > { %v1860_v14 = vpop.eup %1859  ;;  %v1020_v13 = vmul.f32 %v1858_v19, %v2150_v61  ;;  %v1211_v38 = vadd.f32 %v2162_v3, %v1018_v23  ;;  %1361 = vst [vmem:[%s2266_s15 + $0x408] sm:$0xff] %v1209_v27 }
 0x164   : > { %v1862_v16 = vpop.eup %1861  ;;  %v1021_v36 = vmul.f32 %v1860_v14, %v2152_v62  ;;  %v1212_v21 = vadd.f32 %v2164_v4, %v1019_v34  ;;  %1362 = vst [vmem:[%s2266_s15 + $0x410] sm:$0xff] %v1210_v33 }
 0x165   : > { %v1022_v40 = vmul.f32 %v1862_v16, %v2154_v63  ;;  %v1213_v41 = vadd.f32 %v2166_v5, %v1020_v13  ;;  %1363 = vst [vmem:[%s2266_s15 + $0x418] sm:$0xff] %v1211_v38 }
 0x166   : > { %v1214_v18 = vadd.f32 %v2168_v6, %v1021_v36  ;;  %1364 = vst [vmem:[%s2266_s15 + $0x420] sm:$0xff] %v1212_v21  ;;  %v1864_v7 = vpop.eup %1863 }
 0x167   : > { %v1215_v47 = vadd.f32 %v2174_v12, %v1022_v40  ;;  %1365 = vst [vmem:[%s2266_s15 + $0x428] sm:$0xff] %v1213_v41  ;;  %v1866_v42 = vpop.eup %1865  ;;  %v1031_v43 = vmul.f32 %v1864_v7, %v2140_v56 }
 0x168   : > { %1366 = vst [vmem:[%s2266_s15 + $0x430] sm:$0xff] %v1214_v18  ;;  %v1868_v25 = vpop.eup %1867  ;;  %v1032_v17 = vmul.f32 %v1866_v42, %v2142_v57 }
 0x169   : > { %1367 = vst [vmem:[%s2266_s15 + $0x438] sm:$0xff] %v1215_v47  ;;  %v1870_v31 = vpop.eup %1869  ;;  %v1033_v44 = vmul.f32 %v1868_v25, %v2144_v58  ;;  %v1224_v37 = vadd.f32 %v2156_v0, %v1031_v43 }
 0x16a   : > { %v1872_v15 = vpop.eup %1871  ;;  %v1034_v48 = vmul.f32 %v1870_v31, %v2146_v59  ;;  %v1225_v22 = vadd.f32 %v2158_v1, %v1032_v17 }
 0x16b   : > { %v1874_v32 = vpop.eup %1873  ;;  %v1035_v56 = vmul.f32 %v1872_v15, %v2148_v60  ;;  %v1226_v35 = vadd.f32 %v2160_v2, %v1033_v44  ;;  %1376 = vst [vmem:[%s2266_s15 + $0x480] sm:$0xff] %v1224_v37 }
 0x16c   : > { %v1876_v57 = vpop.eup %1875  ;;  %v1036_v58 = vmul.f32 %v1874_v32, %v2150_v61  ;;  %v1227_v0 = vadd.f32 %v2162_v3, %v1034_v48  ;;  %1377 = vst [vmem:[%s2266_s15 + $0x488] sm:$0xff] %v1225_v22 }
 0x16d   : > { %v1878_v59 = vpop.eup %1877  ;;  %v1037_v1 = vmul.f32 %v1876_v57, %v2152_v62  ;;  %v1228_v60 = vadd.f32 %v2164_v4, %v1035_v56  ;;  %1378 = vst [vmem:[%s2266_s15 + $0x490] sm:$0xff] %v1226_v35 }
 0x16e   : > { %v1038_v2 = vmul.f32 %v1878_v59, %v2154_v63  ;;  %v1229_v29 = vadd.f32 %v2166_v5, %v1036_v58  ;;  %1379 = vst [vmem:[%s2266_s15 + $0x498] sm:$0xff] %v1227_v0 }
 0x16f   : > { %v1230_v61 = vadd.f32 %v2168_v6, %v1037_v1  ;;  %1380 = vst [vmem:[%s2266_s15 + $0x4a0] sm:$0xff] %v1228_v60 }
 0x170   : > { %v1231_v62 = vadd.f32 %v2174_v12, %v1038_v2  ;;  %1381 = vst [vmem:[%s2266_s15 + $0x4a8] sm:$0xff] %v1229_v29 }
 0x171   : > { %1382 = vst [vmem:[%s2266_s15 + $0x4b0] sm:$0xff] %v1230_v61 }
 0x172   : > { %1383 = vst [vmem:[%s2266_s15 + $0x4b8] sm:$0xff] %v1231_v62 }
 0x173   : > { %1918 = shalt.err (!%p1915_p3)
}
 0x174   : > { %s1919_s29 = scalar_lea.hbm %s3118_s23, 19456  ;;  %s1923_s4 = scalar_lea.hbm %s3175_s2, 38912 }
 0x175   : > { %p1920_p5 = scmp.ne.s32.totalorder %s3118_s23, %s1919_s29  ;;  %p1924_p9 = scmp.lt.s32.totalorder %s3118_s23, %s3175_s2 }
 0x176   : > { %p1925_p12 = scmp.lt.s32.totalorder %s1923_s4, %s1919_s29 }
 0x177   : > { %p1921_p6 = pnand %p1920_p5, %p2047_p4 }
 0x178   : > { %p1926_p10 = por %p1925_p12, %p1924_p9 }
 0x179   : > { %p1922_p7 = pneg %p1921_p6 }
 0x17b   : > { %p1927_p11 = pnand %p1926_p10, %p1922_p7 }
 0x17d   : > { %1930 = shalt.err (!%p1927_p11)
}
 0x17e   : > { %s1990_s7 = smov 1024   ;;  %s1991_s8 = smov 64  }
 0x17f   : > { %1508 = dma.vmem_to_hbm [thread:$0]  (%p2047_p4), %s3120_s18, 19456, %s3118_s23, %s3128_s24, %s1990_s7, %s1990_s7, %s1991_s8  }
 0x180 PF: > { %p1520_p13 = scmp.ge.s32.totalorder %s1985_s14, 2  ;;  %s1416_s15 = sand.u32 1, %s1965_s9  }
 0x181   : > { %s1417_s16 = scalar_lea.sflag [#allocation4], %s1416_s15 }
 0x182   : > { %p1515_p0 = pnand %p1520_p13, %p2054_p8 }
 0x184   : > { %p1516_p1 = pneg %p1515_p0 }
 0x186   : > { %1960 = dma.done.wait (%p1516_p1), %s1417_s16, 19456  }
 0x187   : > { %1962 = vsyncadd (%p1516_p1), %s1417_s16, 4294947840  ;;  %s16_s14 = sadd.s32 1, %s1985_s14   ;;  %s3180_s9 = smov %s1969_s10 }
 0x188   : > { %p13_p2 = scmp.ge.s32.totalorder %s16_s14, 4   ;;  %s3181_s10 = smov %s1973_s11 }
 0x189   : > { %s3182_s11 = smov %s2060_s22  ;;  %s3183_s12 = smov %s1981_s13 }
 0x18a   : > { %s3184_s13 = smov %s3186_s17  ;;  %15 = sbr.rel (!%p13_p2) target bundleno = 5 (0x5), region = 71 }
 0x18f   :  { %1422 = vsyncpa [#allocation3], 1 }
 0x190   :  { %1424 = vsyncpa [#allocation3 + $0x1], 1 }
 0x191   :  { %1425 = vsyncpa [#allocation4], 1 }
 0x192   :  { %1427 = vsyncpa [#allocation4 + $0x1], 1 }

</bundles_post_ra>
